<compile_context>
chip_gen: v7x
topology: tpu7x:2x2x1
jax: 0.10.0
libtpu: 0.0.40
codegen_flags: <defaults>
</compile_context>

<pallas_src>
import functools

import jax
import jax.numpy as jnp
from jax.experimental import pallas as pl
from jax.experimental.pallas import tpu as pltpu

LANE = 128
SUBLANE = 8


def lstm_model_kernel(emb_ref, wih_ref, whh_ref, b_ref, lenm1_ref,
                      wlin_ref, blin_ref, out_ref):
    """Single-invocation kernel: full LSTM recurrence + last-hidden gather + linear.

    emb_ref   : (T*Bp, E)   bf16 time-major, batch-padded embedded tokens
    wih_ref   : (E, 4*HP)   bf16 input->gates weight, gate-lane-aligned, 0-pad
    whh_ref   : (HP, 4*HP)  bf16 hidden->gates weight, gate-lane-aligned, 0-pad
    b_ref     : (1, 4*HP)   f32  combined bias (b_ih + b_hh), 0-pad
    lenm1_ref : (Bp, 1)     i32  last valid timestep per row (-1: none)
    wlin_ref  : (HP, NP)    f32  classifier weight (transposed), 0-pad
    blin_ref  : (1, NP)     f32  classifier bias, 0-pad
    out_ref   : (Bp, NP)    f32  padded logits (real logits in [:B, :C])
    """
    TB = emb_ref.shape[0]
    HP = whh_ref.shape[0]
    Bp = out_ref.shape[0]
    T = TB // Bp

    # Hoisted input projection (+ combined bias): one big, well-tiled bf16 MXU
    # matmul with f32 accumulation over the whole (T*Bp, E) slab.
    gates_x = (jnp.dot(emb_ref[...], wih_ref[...],
                       preferred_element_type=jnp.float32)
               + b_ref[...])                                   # (T*Bp, 4*HP) f32

    # Loop-invariant loads hoisted out of the recurrence.
    whh = whh_ref[...]                                         # (HP, 4*HP) bf16
    lenm1 = lenm1_ref[...]                                     # (Bp, 1)    i32

    hx = jnp.zeros((Bp, HP), jnp.float32)
    cx = jnp.zeros((Bp, HP), jnp.float32)
    last_h = jnp.zeros((Bp, HP), jnp.float32)

    # Fully unrolled recurrence (T static, small): only hx @ W_hh stays on the
    # serialized critical path; operands are bf16, accumulation and carries f32.
    # TODO(synk): for production T, switch to lax.fori_loop(..., unroll=k) or a
    # time-axis grid with hx/cx/last_h in VMEM scratch to bound vreg live ranges.
    for t in range(T):
        gates = gates_x[t * Bp:(t + 1) * Bp, :] + jnp.dot(
            hx.astype(jnp.bfloat16), whh,
            preferred_element_type=jnp.float32)                # (Bp, 4*HP) f32
        # Gate g occupies lanes [g*HP, (g+1)*HP): full-vreg, lane-aligned
        # slices, no relayout.  Gate order matches torch chunk(4,1):
        # [in, forget, cell, out].
        ingate = jax.nn.sigmoid(gates[:, 0 * HP:1 * HP])
        forgetg = jax.nn.sigmoid(gates[:, 1 * HP:2 * HP])
        cellg = jnp.tanh(gates[:, 2 * HP:3 * HP])
        outg = jax.nn.sigmoid(gates[:, 3 * HP:4 * HP])
        # Padded-lane invariant: padded gate preactivations are exactly 0, so
        # the sigmoid gates there are 0.5 (NOT 0); those lanes stay inert only
        # because cellg_pad = tanh(0) = 0 and cx starts at 0, hence
        # cx_pad = 0.5*0 + 0.5*0 = 0 and hx_pad = 0.5*tanh(0) = 0 every step.
        cx = forgetg * cx + ingate * cellg
        hx = outg * jnp.tanh(cx)
        # Emulates torch.gather(hiddens, 1, lengths-1): keep hx where t is the
        # last valid position of each row.
        last_h = jnp.where(lenm1 == t, hx, last_h)

    out_ref[...] = (jnp.dot(last_h, wlin_ref[...],
                            preferred_element_type=jnp.float32)
                    + blin_ref[...])


def prepare_lstm_params(params):
    """One-time re-layout of LSTMModel parameters into the kernel layout.

    Run once at setup; per-call weight repadding was the dominant wall-time
    cost at these sizes (review feedback).  Gate g lives in lanes
    [g*HP, g*HP + H); padded lanes are zero-weight so they stay inert.
    Matmul operands on the MXU path are cast to bf16 here.
    """
    H = params["w_hh"].shape[1]
    E = params["embed"].shape[1]
    C = params["w_lin"].shape[0]
    HP = ((H + LANE - 1) // LANE) * LANE   # per-gate lane-aligned width
    NP = ((C + LANE - 1) // LANE) * LANE   # lane-dense classifier width

    # NOTE(v5e): HP-padding inflates the per-step matmul N from 4*H to 4*HP;
    # on v5e's 128-wide MXU the unpadded 4*H layout (with XLU gate extracts)
    # may win — verify with a bundle dump before changing.
    wih_t = jnp.transpose(params["w_ih"]).astype(jnp.float32)   # (E, 4H)
    whh_t = jnp.transpose(params["w_hh"]).astype(jnp.float32)   # (H, 4H)
    bias = (params["b_ih"] + params["b_hh"]).astype(jnp.float32)

    wih_p = jnp.zeros((E, 4 * HP), jnp.float32)
    whh_p = jnp.zeros((HP, 4 * HP), jnp.float32)
    b_p = jnp.zeros((1, 4 * HP), jnp.float32)
    for g in range(4):
        wih_p = wih_p.at[:, g * HP:g * HP + H].set(wih_t[:, g * H:(g + 1) * H])
        whh_p = whh_p.at[:H, g * HP:g * HP + H].set(whh_t[:, g * H:(g + 1) * H])
        b_p = b_p.at[:, g * HP:g * HP + H].set(bias[g * H:(g + 1) * H])

    wlin_p = jnp.zeros((HP, NP), jnp.float32).at[:H, :C].set(
        jnp.transpose(params["w_lin"]).astype(jnp.float32))
    blin_p = jnp.zeros((1, NP), jnp.float32).at[:, :C].set(
        params["b_lin"].astype(jnp.float32))

    return {
        "embed_bf16": params["embed"].astype(jnp.bfloat16),   # (V+1, E)
        "wih_bf16": wih_p.astype(jnp.bfloat16),               # (E, 4*HP)
        "whh_bf16": whh_p.astype(jnp.bfloat16),               # (HP, 4*HP)
        "b_p": b_p,                                           # (1, 4*HP) f32
        "wlin_p": wlin_p,                                     # (HP, NP)  f32
        "blin_p": blin_p,                                     # (1, NP)   f32
    }


@functools.partial(jax.jit, static_argnames=("num_classes",))
def lstm_model_forward(x_tokens, x_mask, prepped, num_classes=2):
    """Equivalent of LSTMModel.forward(x, x_mask) -> (B, num_classes) logits."""
    B, T = x_tokens.shape
    E = prepped["embed_bf16"].shape[1]
    HP = prepped["whh_bf16"].shape[0]
    NP = prepped["wlin_p"].shape[1]
    C = num_classes
    Bp = ((B + SUBLANE - 1) // SUBLANE) * SUBLANE   # sublane-aligned batch

    # ---- glue: embedding gather directly in the kernel's time-major layout ----
    emb_tm = prepped["embed_bf16"][x_tokens.T]                  # (T, B, E) bf16
    emb_flat = jnp.pad(emb_tm, ((0, 0), (0, Bp - B), (0, 0))).reshape(T * Bp, E)
    # TODO(synk): for production B*T*E, pass token ids via scalar prefetch and
    # gather embedding rows inside the kernel (Element / manual-DMA BlockSpec)
    # instead of materializing the embedded slab in HBM.

    lenm1 = jnp.sum(x_mask, axis=1).astype(jnp.int32) - 1       # (B,)
    # Padded batch rows never match any timestep (-1 sentinel).
    lenm1 = jnp.pad(lenm1, (0, Bp - B), constant_values=-1).reshape(Bp, 1)

    flops = (2 * T * Bp * E * 4 * HP        # hoisted input projection
             + 2 * T * Bp * HP * 4 * HP     # serialized hx @ W_hh steps
             + 2 * Bp * HP * NP)            # classifier
    transcendentals = 5 * T * Bp * HP       # 3 sigmoid + 2 tanh per step
    bytes_accessed = (emb_flat.size * 2
                      + prepped["wih_bf16"].size * 2
                      + prepped["whh_bf16"].size * 2
                      + prepped["b_p"].size * 4
                      + lenm1.size * 4
                      + prepped["wlin_p"].size * 4
                      + prepped["blin_p"].size * 4
                      + Bp * NP * 4)

    # Footprint is ~0.6 MiB (dominant temp is gates_x (T*Bp, 4*HP) f32), far
    # below every generation's VMEM, so a single full-sequence slab is right.
    # TODO(synk): when T*Bp*(E + 4*HP)*4B approaches tens of MiB, tile the time
    # axis with a grid + VMEM-scratch carries instead of one slab.
    # TODO(synk): on v7x with larger B, add a batch grid axis
    # (grid=(Bp//bt,), dimension_semantics=("parallel",)) so both TensorCores
    # each run half the batch's (independent) recurrence.
    vmem = functools.partial(pl.BlockSpec, memory_space=pltpu.MemorySpace.VMEM)
    out_p = pl.pallas_call(
        lstm_model_kernel,
        out_shape=jax.ShapeDtypeStruct((Bp, NP), jnp.float32),
        in_specs=[vmem()] * 7,
        out_specs=vmem(),
        cost_estimate=pl.CostEstimate(flops=flops,
                                      transcendentals=transcendentals,
                                      bytes_accessed=bytes_accessed),
    )(emb_flat, prepped["wih_bf16"], prepped["whh_bf16"], prepped["b_p"],
      lenm1, prepped["wlin_p"], prepped["blin_p"])
    return out_p[:B, :C]


def reference_forward(x_tokens, x_mask, params):
    """Pure-JAX f32 reference mirroring the PyTorch module."""
    B, T = x_tokens.shape
    H = params["w_hh"].shape[1]
    emb = params["embed"][x_tokens]
    hx = jnp.zeros((B, H), jnp.float32)
    cx = jnp.zeros((B, H), jnp.float32)
    hiddens = []
    for t in range(T):
        gates = (emb[:, t, :] @ params["w_ih"].T + params["b_ih"]
                 + hx @ params["w_hh"].T + params["b_hh"])
        i, f, g, o = jnp.split(gates, 4, axis=1)
        i = jax.nn.sigmoid(i)
        f = jax.nn.sigmoid(f)
        g = jnp.tanh(g)
        o = jax.nn.sigmoid(o)
        cx = f * cx + i * g
        hx = o * jnp.tanh(cx)
        hiddens.append(hx)
    hiddens = jnp.stack(hiddens, axis=1)
    lenm1 = jnp.sum(x_mask, axis=1).astype(jnp.int32) - 1
    last_h = hiddens[jnp.arange(B), lenm1]
    return last_h @ params["w_lin"].T + params["b_lin"]


if __name__ == "__main__":
    B, T = 2, 8
    vocab_size = 50
    E, H = 16, 32         # embedding_size, hidden_size

    key = jax.random.PRNGKey(0)
    ks = jax.random.split(key, 8)
    stdv = 1.0 / (H ** 0.5)

    params = {
        "embed": jax.random.uniform(ks[0], (vocab_size + 1, E),
                                    jnp.float32, -0.1, 0.1),
        "w_ih": jax.random.uniform(ks[1], (4 * H, E), jnp.float32, -stdv, stdv),
        "w_hh": jax.random.uniform(ks[2], (4 * H, H), jnp.float32, -stdv, stdv),
        "b_ih": jax.random.uniform(ks[3], (4 * H,), jnp.float32, -stdv, stdv),
        "b_hh": jax.random.uniform(ks[4], (4 * H,), jnp.float32, -stdv, stdv),
        "w_lin": jax.random.uniform(ks[5], (2, H), jnp.float32, -0.1, 0.1),
        "b_lin": jnp.zeros((2,), jnp.float32),
    }

    x_tokens = jax.random.randint(ks[6], (B, T), 0, vocab_size + 1,
                                  dtype=jnp.int32)
    lengths = jnp.array([5, 8], dtype=jnp.int32)     # valid lengths per row
    x_mask = (jnp.arange(T)[None, :] < lengths[:, None]).astype(jnp.float32)

    # One-time parameter prep (hoisted out of the per-call path).
    prepped = jax.tree_util.tree_map(jax.block_until_ready,
                                     prepare_lstm_params(params))

    out = jax.block_until_ready(
        lstm_model_forward(x_tokens, x_mask, prepped, num_classes=2))
    ref = reference_forward(x_tokens, x_mask, params)
    assert out.shape == (B, 2)
    # bf16 MXU inputs (f32 accumulation / carries): loosened tolerance vs the
    # all-f32 reference.
    assert jnp.allclose(out, ref, atol=3e-2, rtol=3e-2), (out, ref)
    print("KERNEL_OK")
</pallas_src>

<mosaic_0001>
module attributes {stable_mosaic.version = 11 : i64} {
  func.func @lstm_model_kernel(%arg0: memref<64x16xbf16, #tpu.memory_space<vmem>>, %arg1: memref<16x512xbf16, #tpu.memory_space<vmem>>, %arg2: memref<128x512xbf16, #tpu.memory_space<vmem>>, %arg3: memref<1x512xf32, #tpu.memory_space<vmem>>, %arg4: memref<8x1xi32, #tpu.memory_space<vmem>>, %arg5: memref<128x128xf32, #tpu.memory_space<vmem>>, %arg6: memref<1x128xf32, #tpu.memory_space<vmem>>, %arg7: memref<8x128xf32, #tpu.memory_space<vmem>>) attributes {dimension_semantics = [], scalar_prefetch = 0 : i64, scratch_operands = 0 : i64, tpu.core_type = #tpu.core_type<tc>} {
    %c0 = arith.constant 0 : index
    %c0_0 = arith.constant 0 : index
    %0 = vector.load %arg0[%c0, %c0_0] : memref<64x16xbf16, #tpu.memory_space<vmem>>, vector<64x16xbf16>
    %c0_1 = arith.constant 0 : index
    %c0_2 = arith.constant 0 : index
    %1 = vector.load %arg1[%c0_1, %c0_2] : memref<16x512xbf16, #tpu.memory_space<vmem>>, vector<16x512xbf16>
    %cst = arith.constant dense<0.000000e+00> : vector<64x512xf32>
    %2 = tpu.matmul %0, %1, %cst {dimension_numbers = #tpu.dot_dimension_numbers<[1], [0], [0], [1], [0, 0, 1, 1], [], []>} : vector<64x16xbf16>, vector<16x512xbf16>, vector<64x512xf32> -> vector<64x512xf32>
    %c0_3 = arith.constant 0 : index
    %c0_4 = arith.constant 0 : index
    %3 = vector.load %arg3[%c0_3, %c0_4] : memref<1x512xf32, #tpu.memory_space<vmem>>, vector<1x512xf32>
    %4 = vector.broadcast %3 : vector<1x512xf32> to vector<64x512xf32>
    %5 = arith.addf %2, %4 : vector<64x512xf32>
    %c0_5 = arith.constant 0 : index
    %c0_6 = arith.constant 0 : index
    %6 = vector.load %arg2[%c0_5, %c0_6] : memref<128x512xbf16, #tpu.memory_space<vmem>>, vector<128x512xbf16>
    %c0_7 = arith.constant 0 : index
    %c0_8 = arith.constant 0 : index
    %7 = vector.load %arg4[%c0_7, %c0_8] : memref<8x1xi32, #tpu.memory_space<vmem>>, vector<8x1xi32>
    %cst_9 = arith.constant 0.000000e+00 : f32
    %8 = vector.broadcast %cst_9 : f32 to vector<8x128xf32>
    %cst_10 = arith.constant 0.000000e+00 : f32
    %9 = vector.broadcast %cst_10 : f32 to vector<8x128xf32>
    %cst_11 = arith.constant 0.000000e+00 : f32
    %10 = vector.broadcast %cst_11 : f32 to vector<8x128xf32>
    %11 = vector.extract_strided_slice %5 {offsets = [0, 0], sizes = [8, 512], strides = [1, 1]} : vector<64x512xf32> to vector<8x512xf32>
    %12 = arith.truncf %8 : vector<8x128xf32> to vector<8x128xbf16>
    %cst_12 = arith.constant dense<0.000000e+00> : vector<8x512xf32>
    %13 = tpu.matmul %12, %6, %cst_12 {dimension_numbers = #tpu.dot_dimension_numbers<[1], [0], [0], [1], [0, 0, 1, 1], [], []>} : vector<8x128xbf16>, vector<128x512xbf16>, vector<8x512xf32> -> vector<8x512xf32>
    %14 = arith.addf %11, %13 : vector<8x512xf32>
    %15 = vector.extract_strided_slice %14 {offsets = [0, 0], sizes = [8, 128], strides = [1, 1]} : vector<8x512xf32> to vector<8x128xf32>
    %16 = arith.negf %15 : vector<8x128xf32>
    %17 = math.exp %16 : vector<8x128xf32>
    %cst_13 = arith.constant 1.000000e+00 : f32
    %18 = vector.broadcast %cst_13 : f32 to vector<8x128xf32>
    %19 = arith.addf %18, %17 : vector<8x128xf32>
    %20 = arith.divf %18, %19 : vector<8x128xf32>
    %21 = vector.extract_strided_slice %14 {offsets = [0, 128], sizes = [8, 128], strides = [1, 1]} : vector<8x512xf32> to vector<8x128xf32>
    %22 = arith.negf %21 : vector<8x128xf32>
    %23 = math.exp %22 : vector<8x128xf32>
    %cst_14 = arith.constant 1.000000e+00 : f32
    %24 = vector.broadcast %cst_14 : f32 to vector<8x128xf32>
    %25 = arith.addf %24, %23 : vector<8x128xf32>
    %26 = arith.divf %24, %25 : vector<8x128xf32>
    %27 = vector.extract_strided_slice %14 {offsets = [0, 256], sizes = [8, 128], strides = [1, 1]} : vector<8x512xf32> to vector<8x128xf32>
    %28 = math.tanh %27 : vector<8x128xf32>
    %29 = vector.extract_strided_slice %14 {offsets = [0, 384], sizes = [8, 128], strides = [1, 1]} : vector<8x512xf32> to vector<8x128xf32>
    %30 = arith.negf %29 : vector<8x128xf32>
    %31 = math.exp %30 : vector<8x128xf32>
    %cst_15 = arith.constant 1.000000e+00 : f32
    %32 = vector.broadcast %cst_15 : f32 to vector<8x128xf32>
    %33 = arith.addf %32, %31 : vector<8x128xf32>
    %34 = arith.divf %32, %33 : vector<8x128xf32>
    %35 = arith.mulf %26, %9 : vector<8x128xf32>
    %36 = arith.mulf %20, %28 : vector<8x128xf32>
    %37 = arith.addf %35, %36 : vector<8x128xf32>
    %38 = math.tanh %37 : vector<8x128xf32>
    %39 = arith.mulf %34, %38 : vector<8x128xf32>
    %c0_i32 = arith.constant 0 : i32
    %40 = vector.broadcast %c0_i32 : i32 to vector<8x1xi32>
    %41 = arith.cmpi eq, %7, %40 : vector<8x1xi32>
    %42 = vector.shape_cast %41 : vector<8x1xi1> to vector<8x1xi1>
    %43 = vector.broadcast %42 : vector<8x1xi1> to vector<8x128xi1>
    %44 = arith.select %43, %39, %10 : vector<8x128xi1>, vector<8x128xf32>
    %45 = vector.extract_strided_slice %5 {offsets = [8, 0], sizes = [8, 512], strides = [1, 1]} : vector<64x512xf32> to vector<8x512xf32>
    %46 = arith.truncf %39 : vector<8x128xf32> to vector<8x128xbf16>
    %cst_16 = arith.constant dense<0.000000e+00> : vector<8x512xf32>
    %47 = tpu.matmul %46, %6, %cst_16 {dimension_numbers = #tpu.dot_dimension_numbers<[1], [0], [0], [1], [0, 0, 1, 1], [], []>} : vector<8x128xbf16>, vector<128x512xbf16>, vector<8x512xf32> -> vector<8x512xf32>
    %48 = arith.addf %45, %47 : vector<8x512xf32>
    %49 = vector.extract_strided_slice %48 {offsets = [0, 0], sizes = [8, 128], strides = [1, 1]} : vector<8x512xf32> to vector<8x128xf32>
    %50 = arith.negf %49 : vector<8x128xf32>
    %51 = math.exp %50 : vector<8x128xf32>
    %cst_17 = arith.constant 1.000000e+00 : f32
    %52 = vector.broadcast %cst_17 : f32 to vector<8x128xf32>
    %53 = arith.addf %52, %51 : vector<8x128xf32>
    %54 = arith.divf %52, %53 : vector<8x128xf32>
    %55 = vector.extract_strided_slice %48 {offsets = [0, 128], sizes = [8, 128], strides = [1, 1]} : vector<8x512xf32> to vector<8x128xf32>
    %56 = arith.negf %55 : vector<8x128xf32>
    %57 = math.exp %56 : vector<8x128xf32>
    %cst_18 = arith.constant 1.000000e+00 : f32
    %58 = vector.broadcast %cst_18 : f32 to vector<8x128xf32>
    %59 = arith.addf %58, %57 : vector<8x128xf32>
    %60 = arith.divf %58, %59 : vector<8x128xf32>
    %61 = vector.extract_strided_slice %48 {offsets = [0, 256], sizes = [8, 128], strides = [1, 1]} : vector<8x512xf32> to vector<8x128xf32>
    %62 = math.tanh %61 : vector<8x128xf32>
    %63 = vector.extract_strided_slice %48 {offsets = [0, 384], sizes = [8, 128], strides = [1, 1]} : vector<8x512xf32> to vector<8x128xf32>
    %64 = arith.negf %63 : vector<8x128xf32>
    %65 = math.exp %64 : vector<8x128xf32>
    %cst_19 = arith.constant 1.000000e+00 : f32
    %66 = vector.broadcast %cst_19 : f32 to vector<8x128xf32>
    %67 = arith.addf %66, %65 : vector<8x128xf32>
    %68 = arith.divf %66, %67 : vector<8x128xf32>
    %69 = arith.mulf %60, %37 : vector<8x128xf32>
    %70 = arith.mulf %54, %62 : vector<8x128xf32>
    %71 = arith.addf %69, %70 : vector<8x128xf32>
    %72 = math.tanh %71 : vector<8x128xf32>
    %73 = arith.mulf %68, %72 : vector<8x128xf32>
    %c1_i32 = arith.constant 1 : i32
    %74 = vector.broadcast %c1_i32 : i32 to vector<8x1xi32>
    %75 = arith.cmpi eq, %7, %74 : vector<8x1xi32>
    %76 = vector.shape_cast %75 : vector<8x1xi1> to vector<8x1xi1>
    %77 = vector.broadcast %76 : vector<8x1xi1> to vector<8x128xi1>
    %78 = arith.select %77, %73, %44 : vector<8x128xi1>, vector<8x128xf32>
    %79 = vector.extract_strided_slice %5 {offsets = [16, 0], sizes = [8, 512], strides = [1, 1]} : vector<64x512xf32> to vector<8x512xf32>
    %80 = arith.truncf %73 : vector<8x128xf32> to vector<8x128xbf16>
    %cst_20 = arith.constant dense<0.000000e+00> : vector<8x512xf32>
    %81 = tpu.matmul %80, %6, %cst_20 {dimension_numbers = #tpu.dot_dimension_numbers<[1], [0], [0], [1], [0, 0, 1, 1], [], []>} : vector<8x128xbf16>, vector<128x512xbf16>, vector<8x512xf32> -> vector<8x512xf32>
    %82 = arith.addf %79, %81 : vector<8x512xf32>
    %83 = vector.extract_strided_slice %82 {offsets = [0, 0], sizes = [8, 128], strides = [1, 1]} : vector<8x512xf32> to vector<8x128xf32>
    %84 = arith.negf %83 : vector<8x128xf32>
    %85 = math.exp %84 : vector<8x128xf32>
    %cst_21 = arith.constant 1.000000e+00 : f32
    %86 = vector.broadcast %cst_21 : f32 to vector<8x128xf32>
    %87 = arith.addf %86, %85 : vector<8x128xf32>
    %88 = arith.divf %86, %87 : vector<8x128xf32>
    %89 = vector.extract_strided_slice %82 {offsets = [0, 128], sizes = [8, 128], strides = [1, 1]} : vector<8x512xf32> to vector<8x128xf32>
    %90 = arith.negf %89 : vector<8x128xf32>
    %91 = math.exp %90 : vector<8x128xf32>
    %cst_22 = arith.constant 1.000000e+00 : f32
    %92 = vector.broadcast %cst_22 : f32 to vector<8x128xf32>
    %93 = arith.addf %92, %91 : vector<8x128xf32>
    %94 = arith.divf %92, %93 : vector<8x128xf32>
    %95 = vector.extract_strided_slice %82 {offsets = [0, 256], sizes = [8, 128], strides = [1, 1]} : vector<8x512xf32> to vector<8x128xf32>
    %96 = math.tanh %95 : vector<8x128xf32>
    %97 = vector.extract_strided_slice %82 {offsets = [0, 384], sizes = [8, 128], strides = [1, 1]} : vector<8x512xf32> to vector<8x128xf32>
    %98 = arith.negf %97 : vector<8x128xf32>
    %99 = math.exp %98 : vector<8x128xf32>
    %cst_23 = arith.constant 1.000000e+00 : f32
    %100 = vector.broadcast %cst_23 : f32 to vector<8x128xf32>
    %101 = arith.addf %100, %99 : vector<8x128xf32>
    %102 = arith.divf %100, %101 : vector<8x128xf32>
    %103 = arith.mulf %94, %71 : vector<8x128xf32>
    %104 = arith.mulf %88, %96 : vector<8x128xf32>
    %105 = arith.addf %103, %104 : vector<8x128xf32>
    %106 = math.tanh %105 : vector<8x128xf32>
    %107 = arith.mulf %102, %106 : vector<8x128xf32>
    %c2_i32 = arith.constant 2 : i32
    %108 = vector.broadcast %c2_i32 : i32 to vector<8x1xi32>
    %109 = arith.cmpi eq, %7, %108 : vector<8x1xi32>
    %110 = vector.shape_cast %109 : vector<8x1xi1> to vector<8x1xi1>
    %111 = vector.broadcast %110 : vector<8x1xi1> to vector<8x128xi1>
    %112 = arith.select %111, %107, %78 : vector<8x128xi1>, vector<8x128xf32>
    %113 = vector.extract_strided_slice %5 {offsets = [24, 0], sizes = [8, 512], strides = [1, 1]} : vector<64x512xf32> to vector<8x512xf32>
    %114 = arith.truncf %107 : vector<8x128xf32> to vector<8x128xbf16>
    %cst_24 = arith.constant dense<0.000000e+00> : vector<8x512xf32>
    %115 = tpu.matmul %114, %6, %cst_24 {dimension_numbers = #tpu.dot_dimension_numbers<[1], [0], [0], [1], [0, 0, 1, 1], [], []>} : vector<8x128xbf16>, vector<128x512xbf16>, vector<8x512xf32> -> vector<8x512xf32>
    %116 = arith.addf %113, %115 : vector<8x512xf32>
    %117 = vector.extract_strided_slice %116 {offsets = [0, 0], sizes = [8, 128], strides = [1, 1]} : vector<8x512xf32> to vector<8x128xf32>
    %118 = arith.negf %117 : vector<8x128xf32>
    %119 = math.exp %118 : vector<8x128xf32>
    %cst_25 = arith.constant 1.000000e+00 : f32
    %120 = vector.broadcast %cst_25 : f32 to vector<8x128xf32>
    %121 = arith.addf %120, %119 : vector<8x128xf32>
    %122 = arith.divf %120, %121 : vector<8x128xf32>
    %123 = vector.extract_strided_slice %116 {offsets = [0, 128], sizes = [8, 128], strides = [1, 1]} : vector<8x512xf32> to vector<8x128xf32>
    %124 = arith.negf %123 : vector<8x128xf32>
    %125 = math.exp %124 : vector<8x128xf32>
    %cst_26 = arith.constant 1.000000e+00 : f32
    %126 = vector.broadcast %cst_26 : f32 to vector<8x128xf32>
    %127 = arith.addf %126, %125 : vector<8x128xf32>
    %128 = arith.divf %126, %127 : vector<8x128xf32>
    %129 = vector.extract_strided_slice %116 {offsets = [0, 256], sizes = [8, 128], strides = [1, 1]} : vector<8x512xf32> to vector<8x128xf32>
    %130 = math.tanh %129 : vector<8x128xf32>
    %131 = vector.extract_strided_slice %116 {offsets = [0, 384], sizes = [8, 128], strides = [1, 1]} : vector<8x512xf32> to vector<8x128xf32>
    %132 = arith.negf %131 : vector<8x128xf32>
    %133 = math.exp %132 : vector<8x128xf32>
    %cst_27 = arith.constant 1.000000e+00 : f32
    %134 = vector.broadcast %cst_27 : f32 to vector<8x128xf32>
    %135 = arith.addf %134, %133 : vector<8x128xf32>
    %136 = arith.divf %134, %135 : vector<8x128xf32>
    %137 = arith.mulf %128, %105 : vector<8x128xf32>
    %138 = arith.mulf %122, %130 : vector<8x128xf32>
    %139 = arith.addf %137, %138 : vector<8x128xf32>
    %140 = math.tanh %139 : vector<8x128xf32>
    %141 = arith.mulf %136, %140 : vector<8x128xf32>
    %c3_i32 = arith.constant 3 : i32
    %142 = vector.broadcast %c3_i32 : i32 to vector<8x1xi32>
    %143 = arith.cmpi eq, %7, %142 : vector<8x1xi32>
    %144 = vector.shape_cast %143 : vector<8x1xi1> to vector<8x1xi1>
    %145 = vector.broadcast %144 : vector<8x1xi1> to vector<8x128xi1>
    %146 = arith.select %145, %141, %112 : vector<8x128xi1>, vector<8x128xf32>
    %147 = vector.extract_strided_slice %5 {offsets = [32, 0], sizes = [8, 512], strides = [1, 1]} : vector<64x512xf32> to vector<8x512xf32>
    %148 = arith.truncf %141 : vector<8x128xf32> to vector<8x128xbf16>
    %cst_28 = arith.constant dense<0.000000e+00> : vector<8x512xf32>
    %149 = tpu.matmul %148, %6, %cst_28 {dimension_numbers = #tpu.dot_dimension_numbers<[1], [0], [0], [1], [0, 0, 1, 1], [], []>} : vector<8x128xbf16>, vector<128x512xbf16>, vector<8x512xf32> -> vector<8x512xf32>
    %150 = arith.addf %147, %149 : vector<8x512xf32>
    %151 = vector.extract_strided_slice %150 {offsets = [0, 0], sizes = [8, 128], strides = [1, 1]} : vector<8x512xf32> to vector<8x128xf32>
    %152 = arith.negf %151 : vector<8x128xf32>
    %153 = math.exp %152 : vector<8x128xf32>
    %cst_29 = arith.constant 1.000000e+00 : f32
    %154 = vector.broadcast %cst_29 : f32 to vector<8x128xf32>
    %155 = arith.addf %154, %153 : vector<8x128xf32>
    %156 = arith.divf %154, %155 : vector<8x128xf32>
    %157 = vector.extract_strided_slice %150 {offsets = [0, 128], sizes = [8, 128], strides = [1, 1]} : vector<8x512xf32> to vector<8x128xf32>
    %158 = arith.negf %157 : vector<8x128xf32>
    %159 = math.exp %158 : vector<8x128xf32>
    %cst_30 = arith.constant 1.000000e+00 : f32
    %160 = vector.broadcast %cst_30 : f32 to vector<8x128xf32>
    %161 = arith.addf %160, %159 : vector<8x128xf32>
    %162 = arith.divf %160, %161 : vector<8x128xf32>
    %163 = vector.extract_strided_slice %150 {offsets = [0, 256], sizes = [8, 128], strides = [1, 1]} : vector<8x512xf32> to vector<8x128xf32>
    %164 = math.tanh %163 : vector<8x128xf32>
    %165 = vector.extract_strided_slice %150 {offsets = [0, 384], sizes = [8, 128], strides = [1, 1]} : vector<8x512xf32> to vector<8x128xf32>
    %166 = arith.negf %165 : vector<8x128xf32>
    %167 = math.exp %166 : vector<8x128xf32>
    %cst_31 = arith.constant 1.000000e+00 : f32
    %168 = vector.broadcast %cst_31 : f32 to vector<8x128xf32>
    %169 = arith.addf %168, %167 : vector<8x128xf32>
    %170 = arith.divf %168, %169 : vector<8x128xf32>
    %171 = arith.mulf %162, %139 : vector<8x128xf32>
    %172 = arith.mulf %156, %164 : vector<8x128xf32>
    %173 = arith.addf %171, %172 : vector<8x128xf32>
    %174 = math.tanh %173 : vector<8x128xf32>
    %175 = arith.mulf %170, %174 : vector<8x128xf32>
    %c4_i32 = arith.constant 4 : i32
    %176 = vector.broadcast %c4_i32 : i32 to vector<8x1xi32>
    %177 = arith.cmpi eq, %7, %176 : vector<8x1xi32>
    %178 = vector.shape_cast %177 : vector<8x1xi1> to vector<8x1xi1>
    %179 = vector.broadcast %178 : vector<8x1xi1> to vector<8x128xi1>
    %180 = arith.select %179, %175, %146 : vector<8x128xi1>, vector<8x128xf32>
    %181 = vector.extract_strided_slice %5 {offsets = [40, 0], sizes = [8, 512], strides = [1, 1]} : vector<64x512xf32> to vector<8x512xf32>
    %182 = arith.truncf %175 : vector<8x128xf32> to vector<8x128xbf16>
    %cst_32 = arith.constant dense<0.000000e+00> : vector<8x512xf32>
    %183 = tpu.matmul %182, %6, %cst_32 {dimension_numbers = #tpu.dot_dimension_numbers<[1], [0], [0], [1], [0, 0, 1, 1], [], []>} : vector<8x128xbf16>, vector<128x512xbf16>, vector<8x512xf32> -> vector<8x512xf32>
    %184 = arith.addf %181, %183 : vector<8x512xf32>
    %185 = vector.extract_strided_slice %184 {offsets = [0, 0], sizes = [8, 128], strides = [1, 1]} : vector<8x512xf32> to vector<8x128xf32>
    %186 = arith.negf %185 : vector<8x128xf32>
    %187 = math.exp %186 : vector<8x128xf32>
    %cst_33 = arith.constant 1.000000e+00 : f32
    %188 = vector.broadcast %cst_33 : f32 to vector<8x128xf32>
    %189 = arith.addf %188, %187 : vector<8x128xf32>
    %190 = arith.divf %188, %189 : vector<8x128xf32>
    %191 = vector.extract_strided_slice %184 {offsets = [0, 128], sizes = [8, 128], strides = [1, 1]} : vector<8x512xf32> to vector<8x128xf32>
    %192 = arith.negf %191 : vector<8x128xf32>
    %193 = math.exp %192 : vector<8x128xf32>
    %cst_34 = arith.constant 1.000000e+00 : f32
    %194 = vector.broadcast %cst_34 : f32 to vector<8x128xf32>
    %195 = arith.addf %194, %193 : vector<8x128xf32>
    %196 = arith.divf %194, %195 : vector<8x128xf32>
    %197 = vector.extract_strided_slice %184 {offsets = [0, 256], sizes = [8, 128], strides = [1, 1]} : vector<8x512xf32> to vector<8x128xf32>
    %198 = math.tanh %197 : vector<8x128xf32>
    %199 = vector.extract_strided_slice %184 {offsets = [0, 384], sizes = [8, 128], strides = [1, 1]} : vector<8x512xf32> to vector<8x128xf32>
    %200 = arith.negf %199 : vector<8x128xf32>
    %201 = math.exp %200 : vector<8x128xf32>
    %cst_35 = arith.constant 1.000000e+00 : f32
    %202 = vector.broadcast %cst_35 : f32 to vector<8x128xf32>
    %203 = arith.addf %202, %201 : vector<8x128xf32>
    %204 = arith.divf %202, %203 : vector<8x128xf32>
    %205 = arith.mulf %196, %173 : vector<8x128xf32>
    %206 = arith.mulf %190, %198 : vector<8x128xf32>
    %207 = arith.addf %205, %206 : vector<8x128xf32>
    %208 = math.tanh %207 : vector<8x128xf32>
    %209 = arith.mulf %204, %208 : vector<8x128xf32>
    %c5_i32 = arith.constant 5 : i32
    %210 = vector.broadcast %c5_i32 : i32 to vector<8x1xi32>
    %211 = arith.cmpi eq, %7, %210 : vector<8x1xi32>
    %212 = vector.shape_cast %211 : vector<8x1xi1> to vector<8x1xi1>
    %213 = vector.broadcast %212 : vector<8x1xi1> to vector<8x128xi1>
    %214 = arith.select %213, %209, %180 : vector<8x128xi1>, vector<8x128xf32>
    %215 = vector.extract_strided_slice %5 {offsets = [48, 0], sizes = [8, 512], strides = [1, 1]} : vector<64x512xf32> to vector<8x512xf32>
    %216 = arith.truncf %209 : vector<8x128xf32> to vector<8x128xbf16>
    %cst_36 = arith.constant dense<0.000000e+00> : vector<8x512xf32>
    %217 = tpu.matmul %216, %6, %cst_36 {dimension_numbers = #tpu.dot_dimension_numbers<[1], [0], [0], [1], [0, 0, 1, 1], [], []>} : vector<8x128xbf16>, vector<128x512xbf16>, vector<8x512xf32> -> vector<8x512xf32>
    %218 = arith.addf %215, %217 : vector<8x512xf32>
    %219 = vector.extract_strided_slice %218 {offsets = [0, 0], sizes = [8, 128], strides = [1, 1]} : vector<8x512xf32> to vector<8x128xf32>
    %220 = arith.negf %219 : vector<8x128xf32>
    %221 = math.exp %220 : vector<8x128xf32>
    %cst_37 = arith.constant 1.000000e+00 : f32
    %222 = vector.broadcast %cst_37 : f32 to vector<8x128xf32>
    %223 = arith.addf %222, %221 : vector<8x128xf32>
    %224 = arith.divf %222, %223 : vector<8x128xf32>
    %225 = vector.extract_strided_slice %218 {offsets = [0, 128], sizes = [8, 128], strides = [1, 1]} : vector<8x512xf32> to vector<8x128xf32>
    %226 = arith.negf %225 : vector<8x128xf32>
    %227 = math.exp %226 : vector<8x128xf32>
    %cst_38 = arith.constant 1.000000e+00 : f32
    %228 = vector.broadcast %cst_38 : f32 to vector<8x128xf32>
    %229 = arith.addf %228, %227 : vector<8x128xf32>
    %230 = arith.divf %228, %229 : vector<8x128xf32>
    %231 = vector.extract_strided_slice %218 {offsets = [0, 256], sizes = [8, 128], strides = [1, 1]} : vector<8x512xf32> to vector<8x128xf32>
    %232 = math.tanh %231 : vector<8x128xf32>
    %233 = vector.extract_strided_slice %218 {offsets = [0, 384], sizes = [8, 128], strides = [1, 1]} : vector<8x512xf32> to vector<8x128xf32>
    %234 = arith.negf %233 : vector<8x128xf32>
    %235 = math.exp %234 : vector<8x128xf32>
    %cst_39 = arith.constant 1.000000e+00 : f32
    %236 = vector.broadcast %cst_39 : f32 to vector<8x128xf32>
    %237 = arith.addf %236, %235 : vector<8x128xf32>
    %238 = arith.divf %236, %237 : vector<8x128xf32>
    %239 = arith.mulf %230, %207 : vector<8x128xf32>
    %240 = arith.mulf %224, %232 : vector<8x128xf32>
    %241 = arith.addf %239, %240 : vector<8x128xf32>
    %242 = math.tanh %241 : vector<8x128xf32>
    %243 = arith.mulf %238, %242 : vector<8x128xf32>
    %c6_i32 = arith.constant 6 : i32
    %244 = vector.broadcast %c6_i32 : i32 to vector<8x1xi32>
    %245 = arith.cmpi eq, %7, %244 : vector<8x1xi32>
    %246 = vector.shape_cast %245 : vector<8x1xi1> to vector<8x1xi1>
    %247 = vector.broadcast %246 : vector<8x1xi1> to vector<8x128xi1>
    %248 = arith.select %247, %243, %214 : vector<8x128xi1>, vector<8x128xf32>
    %249 = vector.extract_strided_slice %5 {offsets = [56, 0], sizes = [8, 512], strides = [1, 1]} : vector<64x512xf32> to vector<8x512xf32>
    %250 = arith.truncf %243 : vector<8x128xf32> to vector<8x128xbf16>
    %cst_40 = arith.constant dense<0.000000e+00> : vector<8x512xf32>
    %251 = tpu.matmul %250, %6, %cst_40 {dimension_numbers = #tpu.dot_dimension_numbers<[1], [0], [0], [1], [0, 0, 1, 1], [], []>} : vector<8x128xbf16>, vector<128x512xbf16>, vector<8x512xf32> -> vector<8x512xf32>
    %252 = arith.addf %249, %251 : vector<8x512xf32>
    %253 = vector.extract_strided_slice %252 {offsets = [0, 0], sizes = [8, 128], strides = [1, 1]} : vector<8x512xf32> to vector<8x128xf32>
    %254 = arith.negf %253 : vector<8x128xf32>
    %255 = math.exp %254 : vector<8x128xf32>
    %cst_41 = arith.constant 1.000000e+00 : f32
    %256 = vector.broadcast %cst_41 : f32 to vector<8x128xf32>
    %257 = arith.addf %256, %255 : vector<8x128xf32>
    %258 = arith.divf %256, %257 : vector<8x128xf32>
    %259 = vector.extract_strided_slice %252 {offsets = [0, 128], sizes = [8, 128], strides = [1, 1]} : vector<8x512xf32> to vector<8x128xf32>
    %260 = arith.negf %259 : vector<8x128xf32>
    %261 = math.exp %260 : vector<8x128xf32>
    %cst_42 = arith.constant 1.000000e+00 : f32
    %262 = vector.broadcast %cst_42 : f32 to vector<8x128xf32>
    %263 = arith.addf %262, %261 : vector<8x128xf32>
    %264 = arith.divf %262, %263 : vector<8x128xf32>
    %265 = vector.extract_strided_slice %252 {offsets = [0, 256], sizes = [8, 128], strides = [1, 1]} : vector<8x512xf32> to vector<8x128xf32>
    %266 = math.tanh %265 : vector<8x128xf32>
    %267 = vector.extract_strided_slice %252 {offsets = [0, 384], sizes = [8, 128], strides = [1, 1]} : vector<8x512xf32> to vector<8x128xf32>
    %268 = arith.negf %267 : vector<8x128xf32>
    %269 = math.exp %268 : vector<8x128xf32>
    %cst_43 = arith.constant 1.000000e+00 : f32
    %270 = vector.broadcast %cst_43 : f32 to vector<8x128xf32>
    %271 = arith.addf %270, %269 : vector<8x128xf32>
    %272 = arith.divf %270, %271 : vector<8x128xf32>
    %273 = arith.mulf %264, %241 : vector<8x128xf32>
    %274 = arith.mulf %258, %266 : vector<8x128xf32>
    %275 = arith.addf %273, %274 : vector<8x128xf32>
    %276 = math.tanh %275 : vector<8x128xf32>
    %277 = arith.mulf %272, %276 : vector<8x128xf32>
    %c7_i32 = arith.constant 7 : i32
    %278 = vector.broadcast %c7_i32 : i32 to vector<8x1xi32>
    %279 = arith.cmpi eq, %7, %278 : vector<8x1xi32>
    %280 = vector.shape_cast %279 : vector<8x1xi1> to vector<8x1xi1>
    %281 = vector.broadcast %280 : vector<8x1xi1> to vector<8x128xi1>
    %282 = arith.select %281, %277, %248 : vector<8x128xi1>, vector<8x128xf32>
    %c0_44 = arith.constant 0 : index
    %c0_45 = arith.constant 0 : index
    %283 = vector.load %arg5[%c0_44, %c0_45] : memref<128x128xf32, #tpu.memory_space<vmem>>, vector<128x128xf32>
    %cst_46 = arith.constant dense<0.000000e+00> : vector<8x128xf32>
    %284 = tpu.matmul %282, %283, %cst_46 {dimension_numbers = #tpu.dot_dimension_numbers<[1], [0], [0], [1], [0, 0, 1, 1], [], []>} : vector<8x128xf32>, vector<128x128xf32>, vector<8x128xf32> -> vector<8x128xf32>
    %c0_47 = arith.constant 0 : index
    %c0_48 = arith.constant 0 : index
    %285 = vector.load %arg6[%c0_47, %c0_48] : memref<1x128xf32, #tpu.memory_space<vmem>>, vector<1x128xf32>
    %286 = vector.broadcast %285 : vector<1x128xf32> to vector<8x128xf32>
    %287 = arith.addf %284, %286 : vector<8x128xf32>
    %c0_49 = arith.constant 0 : index
    %c0_50 = arith.constant 0 : index
    %288 = vector.load %arg7[%c0_49, %c0_50] : memref<8x128xf32, #tpu.memory_space<vmem>>, vector<8x128xf32>
    tpu.vector_store %arg7[%c0_49, %c0_50], %287 {strides = array<i32>} : memref<8x128xf32, #tpu.memory_space<vmem>>, vector<8x128xf32>,
    return
  }
}

</mosaic_0001>

<bundles_post_ra>
// kernel: lstm_model_forward.1
= control target key start
LH: loop header
LB: loop body
LE: loop exit
PB: predicated region body
PF: predicated region fallthrough
CT: control target
= control target key end

     0   :  { %12 = vsyncpa [#allocation3], 0  ;;  %s1910_s24 = smov [#allocation2]   ;;  %s2657_s0 = inlined_call_operand.vmem [shape: bf16[64,16], index: 0, kind: input, shape index: {}]   ;;  %s2658_s1 = inlined_call_operand.vmem [shape: bf16[16,512], index: 1, kind: input, shape index: {}]   ;;  %s2659_s2 = inlined_call_operand.hbm [shape: bf16[128,512], index: 2, kind: input, shape index: {}]   ;;  %s2660_s3 = inlined_call_operand.vmem [shape: f32[1,512], index: 3, kind: input, shape index: {}]   ;;  %s2661_s4 = inlined_call_operand.vmem [shape: s32[8,1], index: 4, kind: input, shape index: {}]   ;;  %s2662_s5 = inlined_call_operand.vmem [shape: f32[128,128], index: 5, kind: input, shape index: {}]   ;;  %s2663_s6 = inlined_call_operand.vmem [shape: f32[1,128], index: 6, kind: input, shape index: {}]   ;;  %s2664_s7 = inlined_call_operand.vmem [shape: f32[8,128], index: 7, kind: output, shape index: {}]  }
   0x1   :  { %s22_s25 = sshll.u32 %s1910_s24, 4  ;;  %s1886_s28 = scalar_lea.hbm %s2659_s2, 4096  ;;  %s23_s25 = int_to_ptr.vmem [resolvable:$true] %s22_s25 }
   0x2   :  { %p1887_p0 = scmp.ne.s32.totalorder %s2659_s2, %s1886_s28  ;;  %p1890_p1 = scmp.lt.u32.totalorder %s1886_s28, %s2659_s2 }
   0x4   :  { %p1892_p2 = pnand %p1890_p1, %p1887_p0 }
   0x6   :  { %1895 = shalt.err (!%p1892_p2)
}
   0x7   :  { %s1896_s10 = scalar_lea.vmem %s23_s25, 4096  ;;  %p1901_p4 = scmp.lt.s32.totalorder %s23_s25, %s23_s25 }
   0x8   :  { %p1897_p3 = scmp.ne.s32.totalorder %s23_s25, %s1896_s10  ;;  %p1902_p5 = scmp.lt.s32.totalorder %s1896_s10, %s1896_s10 }
   0xa   :  { %p1903_p6 = por %p1902_p5, %p1901_p4 }
   0xc   :  { %p1904_p7 = pnand %p1903_p6, %p1897_p3 }
   0xe   :  { %1907 = shalt.err (!%p1904_p7)
}
   0xf   :  { %s1911_s11 = smov 256   ;;  %s1912_s12 = smov 16  }
  0x10   :  { %28 = dma.hbm_to_vmem [thread:$0]  %s2659_s2, 4096, %s23_s25, [#allocation3], %s1911_s11, %s1911_s11, %s1912_s12  }
  0x11   :  { %1908 = dma.done.wait [#allocation3], 4096  }
  0x12   :  { %1909 = vsyncadd [#allocation3], 4294963200  ;;  %v2665_v0 = vmov 0   ;;  %v1667_v1 = vld [vmem:[%s2658_s1 + $0x4] ss:$16 sps:$4 sm:$0xff]   ;;  %vm115_vm0 = vcmask 130048   ;;  %v55_v44 = vlaneseq }
  0x13   :  { %160 = vmatprep.mubr.bf16.mxu0 %v2665_v0  ;;  %233 = vmatprep.mubr.bf16.mxu1 %v2665_v0  ;;  %v1669_v2 = vld [vmem:[%s2658_s1 + $0xc] ss:$16 sps:$4 sm:$0xff]   ;;  %v1671_v3 = vld [vmem:[%s2658_s1] ss:$16 sps:$4 sm:$0xff]   ;;  %v1672_v4 = vld [vmem:[%s2658_s1 + $0x8] ss:$16 sps:$4 sm:$0xff]  }
  0x14   :  { %1665 = vset.pattern.permute.xlu0 %v2665_v0  ;;  %1666 = vset.pattern.permute.xlu1 %v2665_v0  ;;  %v1673_v5 = vld [vmem:[%s2657_s0] sm:$0xff]   ;;  %v1990_v7 = vld [vmem:[#allocation2 + $0xc] ss:$16 sps:$4 sm:$0xff]   ;;  %v1995_v9 = vld [vmem:[#allocation2 + $0x8] ss:$16 sps:$4 sm:$0xff]   ;;  %v56_v45 = vshrl.u32 %v55_v44, 7 }
  0x15   :  { %128 = vmatprep.subr.bf16.mxu0 %v1667_v1  ;;  %201 = vmatprep.subr.bf16.mxu1 %v1669_v2  ;;  %v1988_v6 = vld [vmem:[#allocation2 + $0x4] ss:$16 sps:$4 sm:$0xff]   ;;  %v1992_v8 = vld [vmem:[#allocation2] ss:$16 sps:$4 sm:$0xff]   ;;  %v2003_v11 = vld [vmem:[#allocation2 + $0x2c] ss:$16 sps:$4 sm:$0xff]  }
  0x16   :  { %129 = vmatpush1.bf16.msra.mxu0 %v1671_v3  ;;  %202 = vmatpush1.bf16.msra.mxu1 %v1672_v4  ;;  %v1999_v10 = vld [vmem:[#allocation2 + $0x24] ss:$16 sps:$4 sm:$0xff]   ;;  %v2005_v12 = vld [vmem:[#allocation2 + $0x20] ss:$16 sps:$4 sm:$0xff]   ;;  %v2007_v13 = vld [vmem:[#allocation2 + $0x28] ss:$16 sps:$4 sm:$0xff]  }
  0x17   :  { %467 = vmatprep.subr.bf16.mxu0 %v1988_v6  ;;  %508 = vmatprep.subr.bf16.mxu1 %v1990_v7  ;;  %v1686_v14 = vld [vmem:[%s2657_s0 + $0x8] sm:$0xff]   ;;  %v2016_v15 = vld [vmem:[#allocation2 + $0x44] ss:$16 sps:$4 sm:$0xff]   ;;  %v2022_v17 = vld [vmem:[#allocation2 + $0x40] ss:$16 sps:$4 sm:$0xff]   ;;  %v65_v46 = vsub.s32 2, %v56_v45 }
  0x18   :  { %v2019_v16 = vld [vmem:[#allocation2 + $0x4c] ss:$16 sps:$4 sm:$0xff]   ;;  %v2024_v18 = vld [vmem:[#allocation2 + $0x48] ss:$16 sps:$4 sm:$0xff]   ;;  %v2028_v19 = vld [vmem:[#allocation2 + $0x64] ss:$16 sps:$4 sm:$0xff]  }
  0x19   :  { %1517 = vmatmul.mubr.msk.bf16.vlgmr.msra.gmra.mrb[0].mxu0 %vm115_vm0, %v1673_v5  ;;  %1521 = vmatmul.mubr.msk.bf16.vlgmr.msra.gmra.mrb[0].mxu1 %vm115_vm0, %v1673_v5  ;;  %v2031_v20 = vld [vmem:[#allocation2 + $0x6c] ss:$16 sps:$4 sm:$0xff]   ;;  %v2035_v21 = vld [vmem:[#allocation2 + $0x60] ss:$16 sps:$4 sm:$0xff]   ;;  %v2038_v22 = vld [vmem:[#allocation2 + $0x68] ss:$16 sps:$4 sm:$0xff]  }
  0x1a   :  { %468 = vmatpush1.bf16.msra.mxu0 %v1992_v8  ;;  %509 = vmatpush1.bf16.msra.mxu1 %v1995_v9  ;;  %v2043_v23 = vld [vmem:[#allocation2 + $0x84] ss:$16 sps:$4 sm:$0xff]   ;;  %v2047_v24 = vld [vmem:[#allocation2 + $0x8c] ss:$16 sps:$4 sm:$0xff]   ;;  %v2053_v26 = vld [vmem:[#allocation2 + $0x80] ss:$16 sps:$4 sm:$0xff]  }
  0x1b   :  { %469 = vmatprep.subr.bf16.mxu0 %v1999_v10  ;;  %510 = vmatprep.subr.bf16.mxu1 %v2003_v11  ;;  %v1699_v25 = vld [vmem:[%s2657_s0 + $0x10] sm:$0xff]   ;;  %v2057_v27 = vld [vmem:[#allocation2 + $0x88] ss:$16 sps:$4 sm:$0xff]   ;;  %v2062_v29 = vld [vmem:[#allocation2 + $0xac] ss:$16 sps:$4 sm:$0xff]   ;;  %v69_v47 = vsub.s32 3, %v56_v45 }
  0x1c   :  { %170 = vmatprep.mubr.bf16.mxu0 %v2665_v0  ;;  %243 = vmatprep.mubr.bf16.mxu1 %v2665_v0  ;;  %v2059_v28 = vld [vmem:[#allocation2 + $0xa4] ss:$16 sps:$4 sm:$0xff]   ;;  %v2067_v30 = vld [vmem:[#allocation2 + $0xa0] ss:$16 sps:$4 sm:$0xff]   ;;  %v2069_v31 = vld [vmem:[#allocation2 + $0xa8] ss:$16 sps:$4 sm:$0xff]  }
  0x1d   :  { %v2074_v32 = vld [vmem:[#allocation2 + $0xc4] ss:$16 sps:$4 sm:$0xff]   ;;  %v2078_v33 = vld [vmem:[#allocation2 + $0xcc] ss:$16 sps:$4 sm:$0xff]   ;;  %v2084_v35 = vld [vmem:[#allocation2 + $0xc0] ss:$16 sps:$4 sm:$0xff]  }
  0x1e   :  { %470 = vmatpush1.bf16.msra.mxu0 %v2005_v12  ;;  %511 = vmatpush1.bf16.msra.mxu1 %v2007_v13  ;;  %v1712_v34 = vld [vmem:[%s2657_s0 + $0x18] sm:$0xff]   ;;  %v2089_v36 = vld [vmem:[%s2661_s4] sm:$0xff]  ;;  %v57_v48 = vsub.s32 0, %v56_v45  ;;  %v61_v50 = vsub.s32 1, %v56_v45 }
  0x1f   :  { %471 = vmatprep.subr.bf16.mxu0 %v2016_v15  ;;  %512 = vmatprep.subr.bf16.mxu1 %v2019_v16  ;;  %v2093_v37 = vld [vmem:[#allocation2 + $0xc8] ss:$16 sps:$4 sm:$0xff]   ;;  %v2095_v38 = vld [vmem:[#allocation2 + $0xe4] ss:$16 sps:$4 sm:$0xff]   ;;  %vm577_vm1 = vcmp.eq.s32.totalorder %v2089_v36, 0  ;;  %vm695_vm2 = vcmp.eq.s32.totalorder %v2089_v36, 1 }
  0x20   :  { %v2099_v39 = vld [vmem:[#allocation2 + $0xec] ss:$16 sps:$4 sm:$0xff]   ;;  %v2104_v40 = vld [vmem:[#allocation2 + $0xe0] ss:$16 sps:$4 sm:$0xff]   ;;  %v578_v41 = vsel %vm577_vm1, 1, %v2665_v0  ;;  %v696_v43 = vsel %vm695_vm2, 1, %v2665_v0 }
  0x21   :  { %1518 = vmatmul.mubr.msk.bf16.gmra.mrb[4].mxu0 %vm115_vm0, %v1686_v14  ;;  %1522 = vmatmul.mubr.msk.bf16.gmra.mrb[4].mxu1 %vm115_vm0, %v1686_v14  ;;  %v2110_v42 = vld [vmem:[#allocation2 + $0xe8] ss:$16 sps:$4 sm:$0xff]   ;;  %v53_v49 = vld [vmem:[%s2660_s3] sm:$0xf]  ;;  %vm813_vm3 = vcmp.eq.s32.totalorder %v2089_v36, 2  ;;  %vm931_vm6 = vcmp.eq.s32.totalorder %v2089_v36, 3 }
  0x22   :  { %472 = vmatpush1.bf16.msra.mxu0 %v2022_v17  ;;  %180 = vmatprep.mubr.bf16.mxu0 %v2665_v0  ;;  %v2159_v51 = vrot.slane %v53_v49, %v65_v46  ;;  %v2165_v54 = vrot.slane %v53_v49, %v69_v47  ;;  %v58_v55 = vrot.slane %v53_v49, %v57_v48  ;;  %vm1049_vm8 = vcmp.eq.s32.totalorder %v2089_v36, 4 }
  0x23   :  { %513 = vmatpush1.bf16.msra.mxu1 %v2024_v18  ;;  %473 = vmatprep.subr.bf16.mxu0 %v2028_v19  ;;  %v62_v58 = vrot.slane %v53_v49, %v61_v50  ;;  %vm1167_vm10 = vcmp.eq.s32.totalorder %v2089_v36, 5 }
  0x24   :  { %514 = vmatprep.subr.bf16.mxu1 %v2031_v20  ;;  %253 = vmatprep.mubr.bf16.mxu1 %v2665_v0 }
  0x25   :  { %580 = vperm.xlu0 %1665, %v578_v41  }
  0x26   :  { %474 = vmatpush1.bf16.msra.mxu0 %v2035_v21 }
  0x27   :  { %515 = vmatpush1.bf16.msra.mxu1 %v2038_v22  ;;  %475 = vmatprep.subr.bf16.mxu0 %v2043_v23 }
  0x28   :  { %516 = vmatprep.subr.bf16.mxu1 %v2047_v24 }
  0x29   :  { %1519 = vmatmul.mubr.msk.bf16.gmra.mrb[8].mxu0 %vm115_vm0, %v1699_v25  ;;  %1523 = vmatmul.mubr.msk.bf16.gmra.mrb[8].mxu1 %vm115_vm0, %v1699_v25 }
  0x2a   :  { %476 = vmatpush1.bf16.msra.mxu0 %v2053_v26  ;;  %190 = vmatprep.mubr.bf16.mxu0 %v2665_v0 }
  0x2b   :  { %517 = vmatpush1.bf16.msra.mxu1 %v2057_v27  ;;  %477 = vmatprep.subr.bf16.mxu0 %v2059_v28 }
  0x2c   :  { %518 = vmatprep.subr.bf16.mxu1 %v2062_v29  ;;  %263 = vmatprep.mubr.bf16.mxu1 %v2665_v0 }
  0x2d   :  { %698 = vperm.xlu0 %1665, %v696_v43  }
  0x2e   :  { %478 = vmatpush1.bf16.msra.mxu0 %v2067_v30 }
  0x2f   :  { %519 = vmatpush1.bf16.msra.mxu1 %v2069_v31  ;;  %479 = vmatprep.subr.bf16.mxu0 %v2074_v32 }
  0x30   :  { %520 = vmatprep.subr.bf16.mxu1 %v2078_v33 }
  0x31   :  { %1520 = vmatmul.mubr.msk.bf16.gmra.mrb[12].mxu0 %vm115_vm0, %v1712_v34  ;;  %1524 = vmatmul.mubr.msk.bf16.gmra.mrb[12].mxu1 %vm115_vm0, %v1712_v34  ;;  %vm1915_vm0 = vmmov 0  }
  0x32   :  { %480 = vmatpush1.bf16.msra.mxu0 %v2084_v35  ;;  %499 = vmatprep.mubr.bf16.mxu0 %v2665_v0 }
  0x33   :  { %521 = vmatpush1.bf16.msra.mxu1 %v2093_v37  ;;  %481 = vmatprep.subr.bf16.mxu0 %v2095_v38 }
  0x34   :  { %522 = vmatprep.subr.bf16.mxu1 %v2099_v39  ;;  %540 = vmatprep.mubr.bf16.mxu1 %v2665_v0 }
  0x36   :  { %482 = vmatpush1.bf16.msra.mxu0 %v2104_v40 }
  0x37   :  { %523 = vmatpush1.bf16.msra.mxu1 %v2110_v42  ;;  %585 = vmatprep.subr.bf16.mxu0 %v1988_v6 }
  0x38   :  { %626 = vmatprep.subr.bf16.mxu1 %v1990_v7 }
  0x39   :  { %500 = vmatmul.mubr.bf16.vlgmr.msra.gmra.mrb[16].mxu0 %v2665_v0 }
  0x3a   :  { %541 = vmatmul.mubr.bf16.vlgmr.msra.gmra.mrb[16].mxu1 %v2665_v0  ;;  %586 = vmatpush1.bf16.msra.mxu0 %v1992_v8 }
  0x3b   :  { %627 = vmatpush1.bf16.msra.mxu1 %v1995_v9  ;;  %587 = vmatprep.subr.bf16.mxu0 %v1999_v10 }
  0x3c   :  { %628 = vmatprep.subr.bf16.mxu1 %v2003_v11  ;;  %617 = vmatprep.mubr.bf16.mxu0 %v2665_v0 }
  0x3d   :  { %658 = vmatprep.mubr.bf16.mxu1 %v2665_v0 }
  0x3e   :  { %588 = vmatpush1.bf16.msra.mxu0 %v2005_v12 }
  0x3f   :  { %629 = vmatpush1.bf16.msra.mxu1 %v2007_v13  ;;  %589 = vmatprep.subr.bf16.mxu0 %v2016_v15 }
  0x40   :  { %630 = vmatprep.subr.bf16.mxu1 %v2019_v16 }
  0x42   :  { %590 = vmatpush1.bf16.msra.mxu0 %v2022_v17 }
  0x43   :  { %631 = vmatpush1.bf16.msra.mxu1 %v2024_v18  ;;  %591 = vmatprep.subr.bf16.mxu0 %v2028_v19 }
  0x44   :  { %632 = vmatprep.subr.bf16.mxu1 %v2031_v20 }
  0x46   :  { %592 = vmatpush1.bf16.msra.mxu0 %v2035_v21 }
  0x47   :  { %633 = vmatpush1.bf16.msra.mxu1 %v2038_v22  ;;  %593 = vmatprep.subr.bf16.mxu0 %v2043_v23 }
  0x48   :  { %634 = vmatprep.subr.bf16.mxu1 %v2047_v24 }
  0x4a   :  { %594 = vmatpush1.bf16.msra.mxu0 %v2053_v26 }
  0x4b   :  { %635 = vmatpush1.bf16.msra.mxu1 %v2057_v27  ;;  %595 = vmatprep.subr.bf16.mxu0 %v2059_v28 }
  0x4c   :  { %636 = vmatprep.subr.bf16.mxu1 %v2062_v29 }
  0x4e   :  { %596 = vmatpush1.bf16.msra.mxu0 %v2067_v30 }
  0x4f   :  { %637 = vmatpush1.bf16.msra.mxu1 %v2069_v31  ;;  %597 = vmatprep.subr.bf16.mxu0 %v2074_v32 }
  0x50   :  { %638 = vmatprep.subr.bf16.mxu1 %v2078_v33 }
  0x52   :  { %598 = vmatpush1.bf16.msra.mxu0 %v2084_v35 }
  0x53   :  { %639 = vmatpush1.bf16.msra.mxu1 %v2093_v37  ;;  %599 = vmatprep.subr.bf16.mxu0 %v2095_v38 }
  0x54   :  { %640 = vmatprep.subr.bf16.mxu1 %v2099_v39 }
  0x56   :  { %600 = vmatpush1.bf16.msra.mxu0 %v2104_v40 }
  0x57   :  { %641 = vmatpush1.bf16.msra.mxu1 %v2110_v42  ;;  %703 = vmatprep.subr.bf16.mxu0 %v1988_v6 }
  0x58   :  { %744 = vmatprep.subr.bf16.mxu1 %v1990_v7 }
  0xec   :  { %v2161_v52 = vpop.f32.mrb[0].mxu0  ;;  %v2163_v53 = vpop.f32.mrb[0].mxu1 }
  0xed   :  { %v164_v56 = vpop.f32.mrb[1].mxu0  ;;  %v237_v57 = vpop.f32.mrb[1].mxu1 }
  0xee   :  { %v166_v59 = vpop.f32.mrb[2].mxu0  ;;  %v239_v60 = vpop.f32.mrb[2].mxu1 }
  0xef   :  { %v2167_v61 = vadd.f32 %v166_v59, %v58_v55  ;;  %v168_v62 = vpop.f32.mrb[3].mxu0  ;;  %v2170_v63 = vadd.f32 %v239_v60, %v2159_v51  ;;  %v241_v1 = vpop.f32.mrb[3].mxu1 }
  0xf0   :  { %v2172_v2 = vadd.f32 %v168_v62, %v62_v58  ;;  %v2175_v3 = vadd.f32 %v241_v1, %v2165_v54 }
  0xf4   :  { %v172_v4 = vpop.f32.mrb[4].mxu0  ;;  %v245_v5 = vpop.f32.mrb[4].mxu1 }
  0xf5   :  { %v2177_v14 = vadd.f32 %v172_v4, %v58_v55  ;;  %v174_v25 = vpop.f32.mrb[5].mxu0  ;;  %v2180_v34 = vadd.f32 %v245_v5, %v2159_v51  ;;  %v247_v41 = vpop.f32.mrb[5].mxu1 }
  0xf6   :  { %v2182_v43 = vadd.f32 %v174_v25, %v62_v58  ;;  %v176_v44 = vpop.f32.mrb[6].mxu0  ;;  %v2185_v45 = vadd.f32 %v247_v41, %v2165_v54  ;;  %v249_v46 = vpop.f32.mrb[6].mxu1 }
  0xf7   :  { %v2187_v47 = vadd.f32 %v176_v44, %v58_v55  ;;  %v178_v48 = vpop.f32.mrb[7].mxu0  ;;  %v2190_v49 = vadd.f32 %v249_v46, %v2159_v51  ;;  %v251_v50 = vpop.f32.mrb[7].mxu1 }
  0xf8   :  { %2667 = vst [vmem:[#allocation5_spill] sm:$0xff] %v2182_v43  ;;  %2668 = vst [vmem:[#allocation6_spill] sm:$0xff] %v2185_v45  ;;  %v2192_v59 = vadd.f32 %v178_v48, %v62_v58  ;;  %v2195_v60 = vadd.f32 %v251_v50, %v2165_v54 }
  0xf9   :  { %2669 = vst [vmem:[#allocation7_spill] sm:$0xff] %v2187_v47  ;;  %2670 = vst [vmem:[#allocation8_spill] sm:$0xff] %v2190_v49 }
  0xfa   :  { %2671 = vst [vmem:[#allocation9_spill] sm:$0xff] %v2192_v59  ;;  %2672 = vst [vmem:[#allocation10_spill] sm:$0xff] %v2195_v60 }
  0xfc   :  { %v182_v62 = vpop.f32.mrb[8].mxu0  ;;  %v255_v1 = vpop.f32.mrb[8].mxu1 }
  0xfd   :  { %v2197_v4 = vadd.f32 %v182_v62, %v58_v55  ;;  %v184_v5 = vpop.f32.mrb[9].mxu0  ;;  %v2200_v25 = vadd.f32 %v255_v1, %v2159_v51  ;;  %v257_v41 = vpop.f32.mrb[9].mxu1 }
  0xfe   :  { %v2202_v44 = vadd.f32 %v184_v5, %v62_v58  ;;  %v186_v0 = vpop.f32.mrb[10].mxu0  ;;  %v2205_v46 = vadd.f32 %v257_v41, %v2165_v54  ;;  %v259_v48 = vpop.f32.mrb[10].mxu1 }
  0xff   :  { %2673 = vst [vmem:[#allocation11_spill] sm:$0xff] %v2197_v4  ;;  %2674 = vst [vmem:[#allocation12_spill] sm:$0xff] %v2200_v25  ;;  %v2207_v59 = vadd.f32 %v186_v0, %v58_v55  ;;  %v188_v50 = vpop.f32.mrb[11].mxu0  ;;  %v2210_v60 = vadd.f32 %v259_v48, %v2159_v51  ;;  %v261_v62 = vpop.f32.mrb[11].mxu1 }
 0x100   :  { %2675 = vst [vmem:[#allocation13_spill] sm:$0xff] %v2202_v44  ;;  %2676 = vst [vmem:[#allocation14_spill] sm:$0xff] %v2205_v46  ;;  %v2212_v4 = vadd.f32 %v188_v50, %v62_v58  ;;  %v2215_v1 = vadd.f32 %v261_v62, %v2165_v54 }
 0x101   :  { %2677 = vst [vmem:[#allocation15_spill] sm:$0xff] %v2207_v59  ;;  %2678 = vst [vmem:[#allocation16_spill] sm:$0xff] %v2210_v60 }
 0x102   :  { %2679 = vst [vmem:[#allocation17_spill] sm:$0xff] %v2212_v4  ;;  %2680 = vst [vmem:[#allocation18_spill] sm:$0xff] %v2215_v1 }
 0x104   :  { %v192_v25 = vpop.f32.mrb[12].mxu0  ;;  %v265_v5 = vpop.f32.mrb[12].mxu1 }
 0x105   :  { %v2217_v44 = vadd.f32 %v192_v25, %v58_v55  ;;  %v194_v49 = vpop.f32.mrb[13].mxu0  ;;  %v2220_v41 = vadd.f32 %v265_v5, %v2159_v51  ;;  %v267_v0 = vpop.f32.mrb[13].mxu1 }
 0x106   :  { %v2222_v59 = vadd.f32 %v194_v49, %v62_v58  ;;  %v196_v46 = vpop.f32.mrb[14].mxu0  ;;  %v2225_v48 = vadd.f32 %v267_v0, %v2165_v54  ;;  %v269_v50 = vpop.f32.mrb[14].mxu1  ;;  %v163_v49 = vadd.f32 %v2161_v52, %v58_v55  ;;  %v236_v0 = vadd.f32 %v2163_v53, %v2159_v51 }
 0x107   :  { %2681 = vst [vmem:[#allocation19_spill] sm:$0xff] %v2217_v44  ;;  %2682 = vst [vmem:[#allocation20_spill] sm:$0xff] %v2220_v41  ;;  %v2227_v4 = vadd.f32 %v196_v46, %v58_v55  ;;  %v198_v62 = vpop.f32.mrb[15].mxu0  ;;  %v2230_v1 = vadd.f32 %v269_v50, %v2159_v51  ;;  %v271_v25 = vpop.f32.mrb[15].mxu1  ;;  %v238_v46 = vadd.f32 %v237_v57, %v2165_v54 }
 0x108   :  { %2683 = vst [vmem:[#allocation21_spill] sm:$0xff] %v2222_v59  ;;  %2684 = vst [vmem:[#allocation22_spill] sm:$0xff] %v2225_v48  ;;  %v2232_v44 = vadd.f32 %v198_v62, %v62_v58  ;;  %v2235_v5 = vadd.f32 %v271_v25, %v2165_v54  ;;  %v165_v59 = vadd.f32 %v164_v56, %v62_v58 }
 0x109   :  { %2685 = vst [vmem:[#allocation23_spill] sm:$0xff] %v2227_v4  ;;  %2686 = vst [vmem:[#allocation24_spill] sm:$0xff] %v2230_v1 }
 0x10a   :  { %2687 = vst [vmem:[#allocation25_spill] sm:$0xff] %v2232_v44  ;;  %2688 = vst [vmem:[#allocation26_spill] sm:$0xff] %v2235_v5 }
 0x10c   :  { %v501_v48 = vpop.f32.mrb[16].mxu0 }
 0x10d   :  { %v549_v4 = vadd.f32 %v501_v48, %v163_v49  ;;  %v542_v41 = vpop.f32.mrb[16].mxu1  ;;  %v503_v60 = vpop.f32.mrb[17].mxu0 }
 0x10e   :  { %v551_v50 = vadd.f32 %v542_v41, %v236_v0  ;;  %v550_v1 = vadd.f32 %v503_v60, %v165_v59  ;;  %v544_v47 = vpop.f32.mrb[17].mxu1  ;;  %v505_v62 = vpop.f32.mrb[18].mxu0 }
 0x10f   :  { %v1557_v44 = vmul.f32 -1.442695, %v549_v4  ;;  %v552_v45 = vadd.f32 %v544_v47, %v238_v46  ;;  %v506_v25 = vpop.f32.mrb[19].mxu0  ;;  %v546_v5 = vpop.f32.mrb[18].mxu1 }
 0x110   :  { %v1558_v43 = vmul.f32 -1.442695, %v550_v1  ;;  %v547_v52 = vpop.f32.mrb[19].mxu1  ;;  %v2689_v5 = vmov 0  }
 0x111   :  { %1725 = vpow2.f32 %v1557_v44  ;;  %v1559_v55 = vmul.f32 -1.442695, %v552_v45  ;;  %v814_v49 = vsel %vm813_vm3, 1, %v2689_v5 }
 0x112   :  { %1727 = vpow2.f32 %v1558_v43  ;;  %816 = vperm.xlu1 %1666, %v814_v49  }
 0x113   :  { %1729 = vpow2.f32 %v1559_v55 }
 0x114   :  { %1731 = vtanh.f32 %v551_v50 }
 0x11b   :  { %v1726_v51 = vpop.eup %1725 }
 0x11c   :  { %v1728_v53 = vpop.eup %1727  ;;  %v556_v56 = vadd.f32 1.0, %v1726_v51 }
 0x11d   :  { %v562_v54 = vadd.f32 1.0, %v1728_v53  ;;  %v1730_v57 = vpop.eup %1729 }
 0x11e   :  { %1733 = vrcp.f32 %v556_v56  ;;  %v1732_v58 = vpop.eup %1731  ;;  %v569_v4 = vadd.f32 1.0, %v1730_v57 }
 0x11f   :  { %1735 = vrcp.f32 %v562_v54 }
 0x120   :  { %1737 = vrcp.f32 %v569_v4 }
 0x128   :  { %v1734_v59 = vpop.eup %1733 }
 0x129   :  { %v1736_v60 = vpop.eup %1735  ;;  %v573_v47 = vmul.f32 %v1734_v59, %v1732_v58 }
 0x12a   :  { %v572_v41 = vmul.f32 0.0, %v1736_v60  ;;  %v1738_v43 = vpop.eup %1737 }
 0x12c   :  { %v2241_v1 = vadd.f32 %v573_v47, %v572_v41 }
 0x12e   :  { %1739 = vtanh.f32 %v2241_v1 }
 0x138   :  { %v1740_v45 = vpop.eup %1739 }
 0x139   :  { %v2244_v44 = vmul.f32 %v1740_v45, %v1738_v43 }
 0x13b   :  { %v584_v48 = vpack.c.bf16 %v2244_v44, %v2244_v44 }
 0x13d   :  { %618 = vmatmul.mubr.bf16.vlgmr.msra.gmra.mrb[20].mxu0 %v584_v48  ;;  %659 = vmatmul.mubr.bf16.vlgmr.msra.gmra.mrb[20].mxu1 %v584_v48 }
 0x13e   :  { %704 = vmatpush1.bf16.msra.mxu0 %v1992_v8  ;;  %745 = vmatpush1.bf16.msra.mxu1 %v1995_v9 }
 0x13f   :  { %705 = vmatprep.subr.bf16.mxu0 %v1999_v10  ;;  %746 = vmatprep.subr.bf16.mxu1 %v2003_v11 }
 0x140   :  { %735 = vmatprep.mubr.bf16.mxu0 %v2689_v5  ;;  %776 = vmatprep.mubr.bf16.mxu1 %v2689_v5 }
 0x142   :  { %706 = vmatpush1.bf16.msra.mxu0 %v2005_v12  ;;  %747 = vmatpush1.bf16.msra.mxu1 %v2007_v13 }
 0x143   :  { %707 = vmatprep.subr.bf16.mxu0 %v2016_v15  ;;  %748 = vmatprep.subr.bf16.mxu1 %v2019_v16 }
 0x146   :  { %708 = vmatpush1.bf16.msra.mxu0 %v2022_v17  ;;  %749 = vmatpush1.bf16.msra.mxu1 %v2024_v18 }
 0x147   :  { %709 = vmatprep.subr.bf16.mxu0 %v2028_v19  ;;  %750 = vmatprep.subr.bf16.mxu1 %v2031_v20 }
 0x14a   :  { %710 = vmatpush1.bf16.msra.mxu0 %v2035_v21  ;;  %751 = vmatpush1.bf16.msra.mxu1 %v2038_v22 }
 0x14b   :  { %711 = vmatprep.subr.bf16.mxu0 %v2043_v23  ;;  %752 = vmatprep.subr.bf16.mxu1 %v2047_v24 }
 0x14e   :  { %712 = vmatpush1.bf16.msra.mxu0 %v2053_v26  ;;  %753 = vmatpush1.bf16.msra.mxu1 %v2057_v27 }
 0x14f   :  { %713 = vmatprep.subr.bf16.mxu0 %v2059_v28  ;;  %754 = vmatprep.subr.bf16.mxu1 %v2062_v29 }
 0x152   :  { %714 = vmatpush1.bf16.msra.mxu0 %v2067_v30  ;;  %755 = vmatpush1.bf16.msra.mxu1 %v2069_v31 }
 0x153   :  { %715 = vmatprep.subr.bf16.mxu0 %v2074_v32  ;;  %756 = vmatprep.subr.bf16.mxu1 %v2078_v33 }
 0x156   :  { %716 = vmatpush1.bf16.msra.mxu0 %v2084_v35  ;;  %757 = vmatpush1.bf16.msra.mxu1 %v2093_v37 }
 0x157   :  { %717 = vmatprep.subr.bf16.mxu0 %v2095_v38  ;;  %758 = vmatprep.subr.bf16.mxu1 %v2099_v39 }
 0x15a   :  { %718 = vmatpush1.bf16.msra.mxu0 %v2104_v40  ;;  %759 = vmatpush1.bf16.msra.mxu1 %v2110_v42 }
 0x15b   :  { %821 = vmatprep.subr.bf16.mxu0 %v1988_v6  ;;  %862 = vmatprep.subr.bf16.mxu1 %v1990_v7 }
 0x210   :  { %v619_v0 = vpop.f32.mrb[20].mxu0  ;;  %v660_v46 = vpop.f32.mrb[20].mxu1 }
 0x211   :  { %v667_v50 = vadd.f32 %v619_v0, %v2167_v61  ;;  %v669_v62 = vadd.f32 %v660_v46, %v2170_v63  ;;  %v621_v25 = vpop.f32.mrb[21].mxu0  ;;  %v662_v52 = vpop.f32.mrb[21].mxu1 }
 0x212   :  { %v668_v55 = vadd.f32 %v621_v25, %v2172_v2  ;;  %v670_v51 = vadd.f32 %v662_v52, %v2175_v3  ;;  %v623_v53 = vpop.f32.mrb[22].mxu0  ;;  %v664_v56 = vpop.f32.mrb[22].mxu1 }
 0x213   :  { %v1560_v54 = vmul.f32 -1.442695, %v667_v50  ;;  %v624_v57 = vpop.f32.mrb[23].mxu0  ;;  %v665_v58 = vpop.f32.mrb[23].mxu1 }
 0x214   :  { %v1561_v59 = vmul.f32 -1.442695, %v668_v55  ;;  %v1562_v60 = vmul.f32 -1.442695, %v670_v51  ;;  %v581_v46 = vpop.permute.xlu0 %580 }
 0x215   :  { %1741 = vpow2.f32 %v1560_v54  ;;  %vm582_vm4 = vcmp.eq.s32.totalorder %v581_v46, 1 }
 0x216   :  { %1743 = vpow2.f32 %v1561_v59  ;;  %v583_v55 = vsel %vm582_vm4, %v2244_v44, 0.0 }
 0x217   :  { %1745 = vpow2.f32 %v1562_v60  ;;  %v2690_v60 = vld [vmem:[#allocation5_spill] sm:$0xff] }
 0x218   :  { %1747 = vtanh.f32 %v669_v62  ;;  %v699_v50 = vpop.permute.xlu0 %698 }
 0x219   :  { %vm700_vm5 = vcmp.eq.s32.totalorder %v699_v50, 1 }
 0x21f   :  { %v1742_v47 = vpop.eup %1741 }
 0x220   :  { %v1744_v4 = vpop.eup %1743  ;;  %v674_v61 = vadd.f32 1.0, %v1742_v47 }
 0x221   :  { %v680_v63 = vadd.f32 1.0, %v1744_v4  ;;  %v1746_v2 = vpop.eup %1745  ;;  %v2691_v4 = vld [vmem:[#allocation6_spill] sm:$0xff] }
 0x222   :  { %1749 = vrcp.f32 %v674_v61  ;;  %v1748_v41 = vpop.eup %1747  ;;  %v687_v48 = vadd.f32 1.0, %v1746_v2 }
 0x223   :  { %1751 = vrcp.f32 %v680_v63 }
 0x224   :  { %1753 = vrcp.f32 %v687_v48 }
 0x22c   :  { %v1750_v3 = vpop.eup %1749 }
 0x22d   :  { %v1752_v43 = vpop.eup %1751  ;;  %v691_v45 = vmul.f32 %v1750_v3, %v1748_v41 }
 0x22e   :  { %v690_v49 = vmul.f32 %v1752_v43, %v2241_v1  ;;  %v1754_v25 = vpop.eup %1753  ;;  %v932_v1 = vsel %vm931_vm6, 1, %v2689_v5 }
 0x22f   :  { %934 = vperm.xlu1 %1666, %v932_v1  }
 0x230   :  { %v2289_v0 = vadd.f32 %v691_v45, %v690_v49 }
 0x232   :  { %1755 = vtanh.f32 %v2289_v0 }
 0x23c   :  { %v1756_v62 = vpop.eup %1755 }
 0x23d   :  { %v694_v52 = vmul.f32 %v1756_v62, %v1754_v25 }
 0x23f   :  { %v2293_v51 = vsel %vm700_vm5, %v694_v52, %v583_v55  ;;  %v702_v53 = vpack.c.bf16 %v694_v52, %v694_v52 }
 0x241   :  { %736 = vmatmul.mubr.bf16.vlgmr.msra.gmra.mrb[24].mxu0 %v702_v53  ;;  %777 = vmatmul.mubr.bf16.vlgmr.msra.gmra.mrb[24].mxu1 %v702_v53 }
 0x242   :  { %822 = vmatpush1.bf16.msra.mxu0 %v1992_v8  ;;  %863 = vmatpush1.bf16.msra.mxu1 %v1995_v9 }
 0x243   :  { %823 = vmatprep.subr.bf16.mxu0 %v1999_v10  ;;  %864 = vmatprep.subr.bf16.mxu1 %v2003_v11 }
 0x244   :  { %853 = vmatprep.mubr.bf16.mxu0 %v2689_v5  ;;  %894 = vmatprep.mubr.bf16.mxu1 %v2689_v5 }
 0x246   :  { %824 = vmatpush1.bf16.msra.mxu0 %v2005_v12  ;;  %865 = vmatpush1.bf16.msra.mxu1 %v2007_v13 }
 0x247   :  { %825 = vmatprep.subr.bf16.mxu0 %v2016_v15  ;;  %866 = vmatprep.subr.bf16.mxu1 %v2019_v16 }
 0x24a   :  { %826 = vmatpush1.bf16.msra.mxu0 %v2022_v17  ;;  %867 = vmatpush1.bf16.msra.mxu1 %v2024_v18 }
 0x24b   :  { %827 = vmatprep.subr.bf16.mxu0 %v2028_v19  ;;  %868 = vmatprep.subr.bf16.mxu1 %v2031_v20 }
 0x24e   :  { %828 = vmatpush1.bf16.msra.mxu0 %v2035_v21  ;;  %869 = vmatpush1.bf16.msra.mxu1 %v2038_v22 }
 0x24f   :  { %829 = vmatprep.subr.bf16.mxu0 %v2043_v23  ;;  %870 = vmatprep.subr.bf16.mxu1 %v2047_v24 }
 0x252   :  { %830 = vmatpush1.bf16.msra.mxu0 %v2053_v26  ;;  %871 = vmatpush1.bf16.msra.mxu1 %v2057_v27 }
 0x253   :  { %831 = vmatprep.subr.bf16.mxu0 %v2059_v28  ;;  %872 = vmatprep.subr.bf16.mxu1 %v2062_v29 }
 0x256   :  { %832 = vmatpush1.bf16.msra.mxu0 %v2067_v30  ;;  %873 = vmatpush1.bf16.msra.mxu1 %v2069_v31 }
 0x257   :  { %833 = vmatprep.subr.bf16.mxu0 %v2074_v32  ;;  %874 = vmatprep.subr.bf16.mxu1 %v2078_v33 }
 0x25a   :  { %834 = vmatpush1.bf16.msra.mxu0 %v2084_v35  ;;  %875 = vmatpush1.bf16.msra.mxu1 %v2093_v37 }
 0x25b   :  { %835 = vmatprep.subr.bf16.mxu0 %v2095_v38  ;;  %876 = vmatprep.subr.bf16.mxu1 %v2099_v39 }
 0x25e   :  { %836 = vmatpush1.bf16.msra.mxu0 %v2104_v40  ;;  %877 = vmatpush1.bf16.msra.mxu1 %v2110_v42 }
 0x25f   :  { %939 = vmatprep.subr.bf16.mxu0 %v1988_v6  ;;  %980 = vmatprep.subr.bf16.mxu1 %v1990_v7 }
 0x314   :  { %v737_v44 = vpop.f32.mrb[24].mxu0  ;;  %v778_v56 = vpop.f32.mrb[24].mxu1 }
 0x315   :  { %v785_v54 = vadd.f32 %v737_v44, %v2177_v14  ;;  %v787_v57 = vadd.f32 %v778_v56, %v2180_v34  ;;  %v739_v58 = vpop.f32.mrb[25].mxu0  ;;  %v780_v59 = vpop.f32.mrb[25].mxu1 }
 0x316   :  { %v786_v47 = vadd.f32 %v739_v58, %v2690_v60  ;;  %v788_v61 = vadd.f32 %v780_v59, %v2691_v4  ;;  %v741_v63 = vpop.f32.mrb[26].mxu0  ;;  %v782_v2 = vpop.f32.mrb[26].mxu1  ;;  %v2694_v4 = vld [vmem:[#allocation9_spill] sm:$0xff] }
 0x317   :  { %v1563_v41 = vmul.f32 -1.442695, %v785_v54  ;;  %v742_v3 = vpop.f32.mrb[27].mxu0  ;;  %v783_v43 = vpop.f32.mrb[27].mxu1  ;;  %v2695_v63 = vld [vmem:[#allocation10_spill] sm:$0xff] }
 0x318   :  { %v1564_v45 = vmul.f32 -1.442695, %v786_v47  ;;  %v1565_v48 = vmul.f32 -1.442695, %v788_v61  ;;  %v817_v56 = vpop.permute.xlu1 %816 }
 0x319   :  { %1757 = vpow2.f32 %v1563_v41  ;;  %vm818_vm7 = vcmp.eq.s32.totalorder %v817_v56, 1 }
 0x31a   :  { %1759 = vpow2.f32 %v1564_v45 }
 0x31b   :  { %1761 = vpow2.f32 %v1565_v48 }
 0x31c   :  { %1763 = vtanh.f32 %v787_v57 }
 0x323   :  { %v1758_v49 = vpop.eup %1757 }
 0x324   :  { %v1760_v46 = vpop.eup %1759  ;;  %v792_v14 = vadd.f32 1.0, %v1758_v49 }
 0x325   :  { %v798_v34 = vadd.f32 1.0, %v1760_v46  ;;  %v1762_v50 = vpop.eup %1761 }
 0x326   :  { %1765 = vrcp.f32 %v792_v14  ;;  %v1764_v25 = vpop.eup %1763  ;;  %v805_v53 = vadd.f32 1.0, %v1762_v50 }
 0x327   :  { %1767 = vrcp.f32 %v798_v34 }
 0x328   :  { %1769 = vrcp.f32 %v805_v53 }
 0x330   :  { %v1766_v62 = vpop.eup %1765 }
 0x331   :  { %v1768_v52 = vpop.eup %1767  ;;  %v809_v55 = vmul.f32 %v1766_v62, %v1764_v25 }
 0x332   :  { %v808_v1 = vmul.f32 %v1768_v52, %v2289_v0  ;;  %v1770_v54 = vpop.eup %1769 }
 0x334   :  { %v2336_v44 = vadd.f32 %v809_v55, %v808_v1 }
 0x336   :  { %1771 = vtanh.f32 %v2336_v44 }
 0x340   :  { %v1772_v58 = vpop.eup %1771 }
 0x341   :  { %v812_v57 = vmul.f32 %v1772_v58, %v1770_v54  ;;  %v935_v54 = vpop.permute.xlu1 %934 }
 0x342   :  { %vm936_vm9 = vcmp.eq.s32.totalorder %v935_v54, 1  ;;  %v2493_v54 = vld [vmem:[#allocation2 + $0x88] ss:$16 sps:$4 sm:$0xff]  }
 0x343   :  { %v2340_v59 = vsel %vm818_vm7, %v812_v57, %v2293_v51  ;;  %v820_v60 = vpack.c.bf16 %v812_v57, %v812_v57 }
 0x345   :  { %854 = vmatmul.mubr.bf16.vlgmr.msra.gmra.mrb[28].mxu0 %v820_v60  ;;  %895 = vmatmul.mubr.bf16.vlgmr.msra.gmra.mrb[28].mxu1 %v820_v60 }
 0x346   :  { %940 = vmatpush1.bf16.msra.mxu0 %v1992_v8  ;;  %981 = vmatpush1.bf16.msra.mxu1 %v1995_v9  ;;  %v1050_v8 = vsel %vm1049_vm8, 1, %v2689_v5 }
 0x347   :  { %941 = vmatprep.subr.bf16.mxu0 %v1999_v10  ;;  %982 = vmatprep.subr.bf16.mxu1 %v2003_v11  ;;  %v2692_v11 = vld [vmem:[#allocation7_spill] sm:$0xff] }
 0x348   :  { %971 = vmatprep.mubr.bf16.mxu0 %v2689_v5  ;;  %1012 = vmatprep.mubr.bf16.mxu1 %v2689_v5 }
 0x349   :  { %1052 = vperm.xlu0 %1665, %v1050_v8  }
 0x34a   :  { %942 = vmatpush1.bf16.msra.mxu0 %v2005_v12  ;;  %983 = vmatpush1.bf16.msra.mxu1 %v2007_v13  ;;  %v2693_v13 = vld [vmem:[#allocation8_spill] sm:$0xff] }
 0x34b   :  { %943 = vmatprep.subr.bf16.mxu0 %v2016_v15  ;;  %984 = vmatprep.subr.bf16.mxu1 %v2019_v16 }
 0x34e   :  { %944 = vmatpush1.bf16.msra.mxu0 %v2022_v17  ;;  %985 = vmatpush1.bf16.msra.mxu1 %v2024_v18 }
 0x34f   :  { %945 = vmatprep.subr.bf16.mxu0 %v2028_v19  ;;  %986 = vmatprep.subr.bf16.mxu1 %v2031_v20 }
 0x352   :  { %946 = vmatpush1.bf16.msra.mxu0 %v2035_v21  ;;  %987 = vmatpush1.bf16.msra.mxu1 %v2038_v22 }
 0x353   :  { %947 = vmatprep.subr.bf16.mxu0 %v2043_v23  ;;  %988 = vmatprep.subr.bf16.mxu1 %v2047_v24 }
 0x356   :  { %948 = vmatpush1.bf16.msra.mxu0 %v2053_v26  ;;  %989 = vmatpush1.bf16.msra.mxu1 %v2057_v27 }
 0x357   :  { %949 = vmatprep.subr.bf16.mxu0 %v2059_v28  ;;  %990 = vmatprep.subr.bf16.mxu1 %v2062_v29 }
 0x35a   :  { %950 = vmatpush1.bf16.msra.mxu0 %v2067_v30  ;;  %991 = vmatpush1.bf16.msra.mxu1 %v2069_v31 }
 0x35b   :  { %951 = vmatprep.subr.bf16.mxu0 %v2074_v32  ;;  %992 = vmatprep.subr.bf16.mxu1 %v2078_v33 }
 0x35e   :  { %952 = vmatpush1.bf16.msra.mxu0 %v2084_v35  ;;  %993 = vmatpush1.bf16.msra.mxu1 %v2093_v37 }
 0x35f   :  { %953 = vmatprep.subr.bf16.mxu0 %v2095_v38  ;;  %994 = vmatprep.subr.bf16.mxu1 %v2099_v39 }
 0x362   :  { %954 = vmatpush1.bf16.msra.mxu0 %v2104_v40  ;;  %995 = vmatpush1.bf16.msra.mxu1 %v2110_v42 }
 0x363   :  { %1057 = vmatprep.subr.bf16.mxu0 %v1988_v6  ;;  %1098 = vmatprep.subr.bf16.mxu1 %v1990_v7 }
 0x418   :  { %v855_v9 = vpop.f32.mrb[28].mxu0  ;;  %v896_v10 = vpop.f32.mrb[28].mxu1 }
 0x419   :  { %v903_v12 = vadd.f32 %v855_v9, %v2692_v11  ;;  %v905_v0 = vadd.f32 %v896_v10, %v2693_v13  ;;  %v857_v51 = vpop.f32.mrb[29].mxu0  ;;  %v898_v47 = vpop.f32.mrb[29].mxu1  ;;  %v2389_v10 = vld [vmem:[#allocation2] ss:$16 sps:$4 sm:$0xff]   ;;  %v2395_v11 = vld [vmem:[#allocation2 + $0x24] ss:$16 sps:$4 sm:$0xff]  }
 0x41a   :  { %v904_v61 = vadd.f32 %v857_v51, %v2694_v4  ;;  %v906_v2 = vadd.f32 %v898_v47, %v2695_v63  ;;  %v859_v6 = vpop.f32.mrb[30].mxu0  ;;  %v900_v41 = vpop.f32.mrb[30].mxu1  ;;  %v2406_v13 = vld [vmem:[#allocation2 + $0x28] ss:$16 sps:$4 sm:$0xff]  }
 0x41b   :  { %v1566_v7 = vmul.f32 -1.442695, %v903_v12  ;;  %v860_v3 = vpop.f32.mrb[31].mxu0  ;;  %v901_v43 = vpop.f32.mrb[31].mxu1  ;;  %v2398_v12 = vld [vmem:[#allocation2 + $0x2c] ss:$16 sps:$4 sm:$0xff]  }
 0x41c   :  { %v1567_v45 = vmul.f32 -1.442695, %v904_v61  ;;  %v1568_v48 = vmul.f32 -1.442695, %v906_v2 }
 0x41d   :  { %1773 = vpow2.f32 %v1566_v7  ;;  %v1053_v7 = vpop.permute.xlu0 %1052 }
 0x41e   :  { %1775 = vpow2.f32 %v1567_v45  ;;  %vm1054_vm11 = vcmp.eq.s32.totalorder %v1053_v7, 1 }
 0x41f   :  { %1777 = vpow2.f32 %v1568_v48 }
 0x420   :  { %1779 = vtanh.f32 %v905_v0 }
 0x427   :  { %v1774_v49 = vpop.eup %1773 }
 0x428   :  { %v1776_v46 = vpop.eup %1775  ;;  %v910_v14 = vadd.f32 1.0, %v1774_v49 }
 0x429   :  { %v916_v34 = vadd.f32 1.0, %v1776_v46  ;;  %v1778_v50 = vpop.eup %1777  ;;  %v2460_v46 = vld [vmem:[#allocation2 + $0x44] ss:$16 sps:$4 sm:$0xff]  }
 0x42a   :  { %1781 = vrcp.f32 %v910_v14  ;;  %v1780_v25 = vpop.eup %1779  ;;  %v923_v53 = vadd.f32 1.0, %v1778_v50  ;;  %v2463_v14 = vld [vmem:[#allocation2 + $0x4c] ss:$16 sps:$4 sm:$0xff]   ;;  %v2469_v50 = vld [vmem:[#allocation2 + $0x48] ss:$16 sps:$4 sm:$0xff]  }
 0x42b   :  { %1783 = vrcp.f32 %v916_v34  ;;  %v2466_v34 = vld [vmem:[#allocation2 + $0x40] ss:$16 sps:$4 sm:$0xff]  }
 0x42c   :  { %1785 = vrcp.f32 %v923_v53  ;;  %v2484_v53 = vld [vmem:[#allocation2 + $0x84] ss:$16 sps:$4 sm:$0xff]  }
 0x434   :  { %v1782_v62 = vpop.eup %1781 }
 0x435   :  { %v1784_v52 = vpop.eup %1783  ;;  %v927_v55 = vmul.f32 %v1782_v62, %v1780_v25  ;;  %v2472_v25 = vld [vmem:[#allocation2 + $0x64] ss:$16 sps:$4 sm:$0xff]   ;;  %v2475_v62 = vld [vmem:[#allocation2 + $0x6c] ss:$16 sps:$4 sm:$0xff]  }
 0x436   :  { %v926_v1 = vmul.f32 %v1784_v52, %v2336_v44  ;;  %v1786_v58 = vpop.eup %1785  ;;  %v2392_v44 = vld [vmem:[#allocation2 + $0x8] ss:$16 sps:$4 sm:$0xff]   ;;  %v2478_v52 = vld [vmem:[#allocation2 + $0x60] ss:$16 sps:$4 sm:$0xff]  }
 0x438   :  { %v2383_v56 = vadd.f32 %v927_v55, %v926_v1  ;;  %v2481_v55 = vld [vmem:[#allocation2 + $0x68] ss:$16 sps:$4 sm:$0xff]   ;;  %v2487_v1 = vld [vmem:[#allocation2 + $0x8c] ss:$16 sps:$4 sm:$0xff]  }
 0x43a   :  { %1787 = vtanh.f32 %v2383_v56 }
 0x444   :  { %v1788_v57 = vpop.eup %1787 }
 0x445   :  { %v930_v60 = vmul.f32 %v1788_v57, %v1786_v58  ;;  %v2496_v58 = vld [vmem:[#allocation2 + $0xa4] ss:$16 sps:$4 sm:$0xff]   ;;  %v2499_v57 = vld [vmem:[#allocation2 + $0xac] ss:$16 sps:$4 sm:$0xff]  }
 0x447   :  { %v2387_v8 = vsel %vm936_vm9, %v930_v60, %v2340_v59  ;;  %v938_v9 = vpack.c.bf16 %v930_v60, %v930_v60  ;;  %v2403_v59 = vld [vmem:[#allocation2 + $0x20] ss:$16 sps:$4 sm:$0xff]  }
 0x448   :  { %v2502_v60 = vld [vmem:[#allocation2 + $0xa0] ss:$16 sps:$4 sm:$0xff]  }
 0x449   :  { %972 = vmatmul.mubr.bf16.vlgmr.msra.gmra.mrb[32].mxu0 %v938_v9  ;;  %1013 = vmatmul.mubr.bf16.vlgmr.msra.gmra.mrb[32].mxu1 %v938_v9  ;;  %v2508_v9 = vld [vmem:[#allocation2 + $0xc4] ss:$16 sps:$4 sm:$0xff]  }
 0x44a   :  { %1058 = vmatpush1.bf16.msra.mxu0 %v2389_v10  ;;  %1099 = vmatpush1.bf16.msra.mxu1 %v2392_v44 }
 0x44b   :  { %1059 = vmatprep.subr.bf16.mxu0 %v2395_v11  ;;  %1100 = vmatprep.subr.bf16.mxu1 %v2398_v12 }
 0x44c   :  { %1089 = vmatprep.mubr.bf16.mxu0 %v2689_v5  ;;  %1130 = vmatprep.mubr.bf16.mxu1 %v2689_v5 }
 0x44e   :  { %1060 = vmatpush1.bf16.msra.mxu0 %v2403_v59  ;;  %1101 = vmatpush1.bf16.msra.mxu1 %v2406_v13 }
 0x44f   :  { %1061 = vmatprep.subr.bf16.mxu0 %v2016_v15  ;;  %1102 = vmatprep.subr.bf16.mxu1 %v2019_v16  ;;  %v2433_v15 = vld [vmem:[#allocation2 + $0x4] ss:$16 sps:$4 sm:$0xff]   ;;  %v2436_v16 = vld [vmem:[#allocation2 + $0xc] ss:$16 sps:$4 sm:$0xff]  }
 0x452   :  { %1062 = vmatpush1.bf16.msra.mxu0 %v2022_v17  ;;  %1103 = vmatpush1.bf16.msra.mxu1 %v2024_v18  ;;  %v1168_v17 = vsel %vm1167_vm10, 1, %v2689_v5 }
 0x453   :  { %1063 = vmatprep.subr.bf16.mxu0 %v2028_v19  ;;  %1104 = vmatprep.subr.bf16.mxu1 %v2031_v20  ;;  %v2696_v20 = vld [vmem:[#allocation11_spill] sm:$0xff] }
 0x454   :  { %1170 = vperm.xlu1 %1666, %v1168_v17   ;;  %v2511_v17 = vld [vmem:[#allocation2 + $0xcc] ss:$16 sps:$4 sm:$0xff]  }
 0x456   :  { %1064 = vmatpush1.bf16.msra.mxu0 %v2035_v21  ;;  %1105 = vmatpush1.bf16.msra.mxu1 %v2038_v22  ;;  %v2697_v22 = vld [vmem:[#allocation12_spill] sm:$0xff] }
 0x457   :  { %1065 = vmatprep.subr.bf16.mxu0 %v2043_v23  ;;  %1106 = vmatprep.subr.bf16.mxu1 %v2047_v24 }
 0x45a   :  { %1066 = vmatpush1.bf16.msra.mxu0 %v2053_v26  ;;  %1107 = vmatpush1.bf16.msra.mxu1 %v2057_v27  ;;  %v2698_v27 = vld [vmem:[#allocation13_spill] sm:$0xff] }
 0x45b   :  { %1067 = vmatprep.subr.bf16.mxu0 %v2059_v28  ;;  %1108 = vmatprep.subr.bf16.mxu1 %v2062_v29  ;;  %v2699_v29 = vld [vmem:[#allocation14_spill] sm:$0xff] }
 0x45e   :  { %1068 = vmatpush1.bf16.msra.mxu0 %v2067_v30  ;;  %1109 = vmatpush1.bf16.msra.mxu1 %v2069_v31 }
 0x45f   :  { %1069 = vmatprep.subr.bf16.mxu0 %v2074_v32  ;;  %1110 = vmatprep.subr.bf16.mxu1 %v2078_v33 }
 0x462   :  { %1070 = vmatpush1.bf16.msra.mxu0 %v2084_v35  ;;  %1111 = vmatpush1.bf16.msra.mxu1 %v2093_v37 }
 0x463   :  { %1071 = vmatprep.subr.bf16.mxu0 %v2095_v38  ;;  %1112 = vmatprep.subr.bf16.mxu1 %v2099_v39 }
 0x466   :  { %1072 = vmatpush1.bf16.msra.mxu0 %v2104_v40  ;;  %1113 = vmatpush1.bf16.msra.mxu1 %v2110_v42 }
 0x467   :  { %1175 = vmatprep.subr.bf16.mxu0 %v2433_v15  ;;  %1216 = vmatprep.subr.bf16.mxu1 %v2436_v16 }
 0x51c   :  { %v973_v18 = vpop.f32.mrb[32].mxu0  ;;  %v1014_v19 = vpop.f32.mrb[32].mxu1 }
 0x51d   :  { %v1021_v21 = vadd.f32 %v973_v18, %v2696_v20  ;;  %v1023_v23 = vadd.f32 %v1014_v19, %v2697_v22  ;;  %v975_v24 = vpop.f32.mrb[33].mxu0  ;;  %v1016_v26 = vpop.f32.mrb[33].mxu1  ;;  %v2514_v18 = vld [vmem:[#allocation2 + $0xc0] ss:$16 sps:$4 sm:$0xff]   ;;  %v2517_v19 = vld [vmem:[#allocation2 + $0xc8] ss:$16 sps:$4 sm:$0xff]  }
 0x51e   :  { %v1022_v28 = vadd.f32 %v975_v24, %v2698_v27  ;;  %v1024_v30 = vadd.f32 %v1016_v26, %v2699_v29  ;;  %v977_v31 = vpop.f32.mrb[34].mxu0  ;;  %v1018_v32 = vpop.f32.mrb[34].mxu1  ;;  %v2520_v20 = vld [vmem:[#allocation2 + $0xe4] ss:$16 sps:$4 sm:$0xff]   ;;  %v2526_v22 = vld [vmem:[#allocation2 + $0xe0] ss:$16 sps:$4 sm:$0xff]  }
 0x51f   :  { %v1569_v33 = vmul.f32 -1.442695, %v1021_v21  ;;  %v978_v35 = vpop.f32.mrb[35].mxu0  ;;  %v1019_v36 = vpop.f32.mrb[35].mxu1  ;;  %v2523_v21 = vld [vmem:[#allocation2 + $0xec] ss:$16 sps:$4 sm:$0xff]  }
 0x520   :  { %v1570_v37 = vmul.f32 -1.442695, %v1022_v28  ;;  %v1571_v38 = vmul.f32 -1.442695, %v1024_v30  ;;  %v2537_v24 = vld [vmem:[%s2661_s4] sm:$0xff]  ;;  %v2700_v29 = vld [vmem:[#allocation15_spill] sm:$0xff] }
 0x521   :  { %1789 = vpow2.f32 %v1569_v33  ;;  %vm1285_vm12 = vcmp.eq.s32.totalorder %v2537_v24, 6  ;;  %v2701_v31 = vld [vmem:[#allocation16_spill] sm:$0xff]  ;;  %v2702_v35 = vld [vmem:[#allocation17_spill] sm:$0xff]  ;;  %v2703_v36 = vld [vmem:[#allocation18_spill] sm:$0xff]  ;;  %vm1403_vm14 = vcmp.eq.s32.totalorder %v2537_v24, 7 }
 0x522   :  { %1791 = vpow2.f32 %v1570_v37  ;;  %v1286_v26 = vsel %vm1285_vm12, 1, %v2689_v5 }
 0x523   :  { %1793 = vpow2.f32 %v1571_v38  ;;  %1288 = vperm.xlu0 %1665, %v1286_v26  }
 0x524   :  { %1795 = vtanh.f32 %v1023_v23  ;;  %v2529_v23 = vld [vmem:[#allocation2 + $0xe8] ss:$16 sps:$4 sm:$0xff]  }
 0x52b   :  { %v1790_v39 = vpop.eup %1789 }
 0x52c   :  { %v1792_v40 = vpop.eup %1791  ;;  %v1028_v42 = vadd.f32 1.0, %v1790_v39 }
 0x52d   :  { %v1034_v0 = vadd.f32 1.0, %v1792_v40  ;;  %v1794_v51 = vpop.eup %1793 }
 0x52e   :  { %1797 = vrcp.f32 %v1028_v42  ;;  %v1796_v47 = vpop.eup %1795  ;;  %v1041_v2 = vadd.f32 1.0, %v1794_v51 }
 0x52f   :  { %1799 = vrcp.f32 %v1034_v0 }
 0x530   :  { %1801 = vrcp.f32 %v1041_v2 }
 0x538   :  { %v1798_v4 = vpop.eup %1797 }
 0x539   :  { %v1800_v61 = vpop.eup %1799  ;;  %v1045_v63 = vmul.f32 %v1798_v4, %v1796_v47 }
 0x53a   :  { %v1044_v6 = vmul.f32 %v1800_v61, %v2383_v56  ;;  %v1802_v3 = vpop.eup %1801  ;;  %v2490_v56 = vld [vmem:[#allocation2 + $0x80] ss:$16 sps:$4 sm:$0xff]  }
 0x53c   :  { %v2446_v41 = vadd.f32 %v1045_v63, %v1044_v6 }
 0x53e   :  { %1803 = vtanh.f32 %v2446_v41 }
 0x548   :  { %v1804_v43 = vpop.eup %1803 }
 0x549   :  { %v1048_v45 = vmul.f32 %v1804_v43, %v1802_v3 }
 0x54b   :  { %v2450_v48 = vsel %vm1054_vm11, %v1048_v45, %v2387_v8  ;;  %v1056_v49 = vpack.c.bf16 %v1048_v45, %v1048_v45  ;;  %v2505_v8 = vld [vmem:[#allocation2 + $0xa8] ss:$16 sps:$4 sm:$0xff]  }
 0x54d   :  { %1090 = vmatmul.mubr.bf16.vlgmr.msra.gmra.mrb[36].mxu0 %v1056_v49  ;;  %1131 = vmatmul.mubr.bf16.vlgmr.msra.gmra.mrb[36].mxu1 %v1056_v49 }
 0x54e   :  { %1176 = vmatpush1.bf16.msra.mxu0 %v2389_v10  ;;  %1217 = vmatpush1.bf16.msra.mxu1 %v2392_v44 }
 0x54f   :  { %1177 = vmatprep.subr.bf16.mxu0 %v2395_v11  ;;  %1218 = vmatprep.subr.bf16.mxu1 %v2398_v12 }
 0x550   :  { %1207 = vmatprep.mubr.bf16.mxu0 %v2689_v5  ;;  %1248 = vmatprep.mubr.bf16.mxu1 %v2689_v5 }
 0x552   :  { %1178 = vmatpush1.bf16.msra.mxu0 %v2403_v59  ;;  %1219 = vmatpush1.bf16.msra.mxu1 %v2406_v13 }
 0x553   :  { %1179 = vmatprep.subr.bf16.mxu0 %v2460_v46  ;;  %1220 = vmatprep.subr.bf16.mxu1 %v2463_v14 }
 0x556   :  { %1180 = vmatpush1.bf16.msra.mxu0 %v2466_v34  ;;  %1221 = vmatpush1.bf16.msra.mxu1 %v2469_v50 }
 0x557   :  { %1181 = vmatprep.subr.bf16.mxu0 %v2472_v25  ;;  %1222 = vmatprep.subr.bf16.mxu1 %v2475_v62 }
 0x55a   :  { %1182 = vmatpush1.bf16.msra.mxu0 %v2478_v52  ;;  %1223 = vmatpush1.bf16.msra.mxu1 %v2481_v55 }
 0x55b   :  { %1183 = vmatprep.subr.bf16.mxu0 %v2484_v53  ;;  %1224 = vmatprep.subr.bf16.mxu1 %v2487_v1 }
 0x55e   :  { %1184 = vmatpush1.bf16.msra.mxu0 %v2490_v56  ;;  %1225 = vmatpush1.bf16.msra.mxu1 %v2493_v54 }
 0x55f   :  { %1185 = vmatprep.subr.bf16.mxu0 %v2496_v58  ;;  %1226 = vmatprep.subr.bf16.mxu1 %v2499_v57 }
 0x562   :  { %1186 = vmatpush1.bf16.msra.mxu0 %v2502_v60  ;;  %1227 = vmatpush1.bf16.msra.mxu1 %v2505_v8 }
 0x563   :  { %1187 = vmatprep.subr.bf16.mxu0 %v2508_v9  ;;  %1228 = vmatprep.subr.bf16.mxu1 %v2511_v17 }
 0x566   :  { %1188 = vmatpush1.bf16.msra.mxu0 %v2514_v18  ;;  %1229 = vmatpush1.bf16.msra.mxu1 %v2517_v19 }
 0x567   :  { %1189 = vmatprep.subr.bf16.mxu0 %v2520_v20  ;;  %1230 = vmatprep.subr.bf16.mxu1 %v2523_v21 }
 0x56a   :  { %1190 = vmatpush1.bf16.msra.mxu0 %v2526_v22  ;;  %1231 = vmatpush1.bf16.msra.mxu1 %v2529_v23 }
 0x56b   :  { %1293 = vmatprep.subr.bf16.mxu0 %v2433_v15  ;;  %1334 = vmatprep.subr.bf16.mxu1 %v2436_v16 }
 0x620   :  { %v1091_v27 = vpop.f32.mrb[36].mxu0  ;;  %v1132_v28 = vpop.f32.mrb[36].mxu1 }
 0x621   :  { %v1139_v30 = vadd.f32 %v1091_v27, %v2700_v29  ;;  %v1141_v32 = vadd.f32 %v1132_v28, %v2701_v31  ;;  %v1093_v33 = vpop.f32.mrb[37].mxu0  ;;  %v1134_v15 = vpop.f32.mrb[37].mxu1 }
 0x622   :  { %v1140_v16 = vadd.f32 %v1093_v33, %v2702_v35  ;;  %v1142_v37 = vadd.f32 %v1134_v15, %v2703_v36  ;;  %v1095_v38 = vpop.f32.mrb[38].mxu0  ;;  %v1136_v39 = vpop.f32.mrb[38].mxu1 }
 0x623   :  { %v1572_v40 = vmul.f32 -1.442695, %v1139_v30  ;;  %v1096_v42 = vpop.f32.mrb[39].mxu0  ;;  %v1137_v0 = vpop.f32.mrb[39].mxu1  ;;  %v1411_v38 = vld [vmem:[%s2662_s5 + $0x8] sm:$0xff] }
 0x624   :  { %v1573_v51 = vmul.f32 -1.442695, %v1140_v16  ;;  %v1574_v47 = vmul.f32 -1.442695, %v1142_v37  ;;  %v1171_v28 = vpop.permute.xlu1 %1170  ;;  %v1410_v37 = vld [vmem:[%s2662_s5] sm:$0xff]  ;;  %v1412_v42 = vld [vmem:[%s2662_s5 + $0x10] sm:$0xff] }
 0x625   :  { %1805 = vpow2.f32 %v1572_v40  ;;  %vm1172_vm13 = vcmp.eq.s32.totalorder %v1171_v28, 1  ;;  %v1635_v39 = vpack.c.bf16 %v1411_v38, %v1410_v37  ;;  %v1914_v40 = vmov 0.0|0.0   ;;  %v1413_v0 = vld [vmem:[%s2662_s5 + $0x18] sm:$0xff]  ;;  %v1423_v28 = vld [vmem:[%s2662_s5 + $0x68] sm:$0xff]  ;;  %v1581_v37 = vld [vmem:[%s2663_s6] ss:$0 sm:$0xff] }
 0x626   :  { %1807 = vpow2.f32 %v1573_v51  ;;  %v1638_v51 = vpack.c.bf16 %v1413_v0, %v1412_v42 }
 0x627   :  { %1809 = vpow2.f32 %v1574_v47  ;;  %v1414_v47 = vld [vmem:[%s2662_s5 + $0x20] sm:$0xff] }
 0x628   :  { %1811 = vtanh.f32 %v1141_v32 }
 0x62f   :  { %v1806_v4 = vpop.eup %1805 }
 0x630   :  { %v1808_v61 = vpop.eup %1807  ;;  %v1146_v63 = vadd.f32 1.0, %v1806_v4  ;;  %v1415_v4 = vld [vmem:[%s2662_s5 + $0x28] sm:$0xff] }
 0x631   :  { %v1152_v2 = vadd.f32 1.0, %v1808_v61  ;;  %v1810_v6 = vpop.eup %1809  ;;  %v1641_v61 = vpack.c.bf16 %v1415_v4, %v1414_v47 }
 0x632   :  { %1813 = vrcp.f32 %v1146_v63  ;;  %v1812_v7 = vpop.eup %1811  ;;  %v1159_v49 = vadd.f32 1.0, %v1810_v6  ;;  %v1416_v63 = vld [vmem:[%s2662_s5 + $0x30] sm:$0xff] }
 0x633   :  { %1815 = vrcp.f32 %v1152_v2  ;;  %v1417_v2 = vld [vmem:[%s2662_s5 + $0x38] sm:$0xff] }
 0x634   :  { %1817 = vrcp.f32 %v1159_v49  ;;  %v1644_v6 = vpack.c.bf16 %v1417_v2, %v1416_v63  ;;  %v1421_v49 = vld [vmem:[%s2662_s5 + $0x58] sm:$0xff] }
 0x63c   :  { %v1814_v3 = vpop.eup %1813 }
 0x63d   :  { %v1816_v43 = vpop.eup %1815  ;;  %v1163_v45 = vmul.f32 %v1814_v3, %v1812_v7  ;;  %v1418_v7 = vld [vmem:[%s2662_s5 + $0x40] sm:$0xff]  ;;  %v1419_v3 = vld [vmem:[%s2662_s5 + $0x48] sm:$0xff] }
 0x63e   :  { %v1162_v26 = vmul.f32 %v1816_v43, %v2446_v41  ;;  %v1818_v29 = vpop.eup %1817  ;;  %v1647_v43 = vpack.c.bf16 %v1419_v3, %v1418_v7 }
 0x640   :  { %v2546_v27 = vadd.f32 %v1163_v45, %v1162_v26  ;;  %v1420_v45 = vld [vmem:[%s2662_s5 + $0x50] sm:$0xff] }
 0x641   :  { %v1650_v26 = vpack.c.bf16 %v1421_v49, %v1420_v45 }
 0x642   :  { %1819 = vtanh.f32 %v2546_v27 }
 0x64c   :  { %v1820_v30 = vpop.eup %1819 }
 0x64d   :  { %v1166_v31 = vmul.f32 %v1820_v30, %v1818_v29  ;;  %v1424_v30 = vld [vmem:[%s2662_s5 + $0x70] sm:$0xff] }
 0x64f   :  { %v2550_v32 = vsel %vm1172_vm13, %v1166_v31, %v2450_v48  ;;  %v1174_v33 = vpack.c.bf16 %v1166_v31, %v1166_v31  ;;  %v1425_v31 = vld [vmem:[%s2662_s5 + $0x78] sm:$0xff] }
 0x651   :  { %1208 = vmatmul.mubr.bf16.vlgmr.msra.gmra.mrb[40].mxu0 %v1174_v33  ;;  %1249 = vmatmul.mubr.bf16.vlgmr.msra.gmra.mrb[40].mxu1 %v1174_v33  ;;  %v1916_v33 = vmov 0.0  }
 0x652   :  { %1294 = vmatpush1.bf16.msra.mxu0 %v2389_v10  ;;  %1335 = vmatpush1.bf16.msra.mxu1 %v2392_v44  ;;  %v1404_v10 = vsel %vm1403_vm14, 1, %v2689_v5 }
 0x653   :  { %1295 = vmatprep.subr.bf16.mxu0 %v2395_v11  ;;  %1336 = vmatprep.subr.bf16.mxu1 %v2398_v12  ;;  %v2704_v12 = vld [vmem:[#allocation19_spill] sm:$0xff] }
 0x654   :  { %1325 = vmatprep.mubr.bf16.mxu0 %v2689_v5  ;;  %1366 = vmatprep.mubr.bf16.mxu1 %v2689_v5 }
 0x655   :  { %1406 = vperm.xlu1 %1666, %v1404_v10  }
 0x656   :  { %1296 = vmatpush1.bf16.msra.mxu0 %v2403_v59  ;;  %1337 = vmatpush1.bf16.msra.mxu1 %v2406_v13  ;;  %v2705_v13 = vld [vmem:[#allocation20_spill] sm:$0xff] }
 0x657   :  { %1297 = vmatprep.subr.bf16.mxu0 %v2460_v46  ;;  %1338 = vmatprep.subr.bf16.mxu1 %v2463_v14  ;;  %v2706_v14 = vld [vmem:[#allocation21_spill] sm:$0xff] }
 0x65a   :  { %1298 = vmatpush1.bf16.msra.mxu0 %v2466_v34  ;;  %1339 = vmatpush1.bf16.msra.mxu1 %v2469_v50  ;;  %v2707_v50 = vld [vmem:[#allocation22_spill] sm:$0xff] }
 0x65b   :  { %1299 = vmatprep.subr.bf16.mxu0 %v2472_v25  ;;  %1340 = vmatprep.subr.bf16.mxu1 %v2475_v62 }
 0x65e   :  { %1300 = vmatpush1.bf16.msra.mxu0 %v2478_v52  ;;  %1341 = vmatpush1.bf16.msra.mxu1 %v2481_v55 }
 0x65f   :  { %1301 = vmatprep.subr.bf16.mxu0 %v2484_v53  ;;  %1342 = vmatprep.subr.bf16.mxu1 %v2487_v1 }
 0x662   :  { %1302 = vmatpush1.bf16.msra.mxu0 %v2490_v56  ;;  %1343 = vmatpush1.bf16.msra.mxu1 %v2493_v54 }
 0x663   :  { %1303 = vmatprep.subr.bf16.mxu0 %v2496_v58  ;;  %1344 = vmatprep.subr.bf16.mxu1 %v2499_v57 }
 0x666   :  { %1304 = vmatpush1.bf16.msra.mxu0 %v2502_v60  ;;  %1345 = vmatpush1.bf16.msra.mxu1 %v2505_v8 }
 0x667   :  { %1305 = vmatprep.subr.bf16.mxu0 %v2508_v9  ;;  %1346 = vmatprep.subr.bf16.mxu1 %v2511_v17 }
 0x66a   :  { %1306 = vmatpush1.bf16.msra.mxu0 %v2514_v18  ;;  %1347 = vmatpush1.bf16.msra.mxu1 %v2517_v19 }
 0x66b   :  { %1307 = vmatprep.subr.bf16.mxu0 %v2520_v20  ;;  %1348 = vmatprep.subr.bf16.mxu1 %v2523_v21 }
 0x66e   :  { %1308 = vmatpush1.bf16.msra.mxu0 %v2526_v22  ;;  %1349 = vmatpush1.bf16.msra.mxu1 %v2529_v23  ;;  %v1289_v23 = vpop.permute.xlu0 %1288 }
 0x66f   :  { %vm1290_vm15 = vcmp.eq.s32.totalorder %v1289_v23, 1  ;;  %1634 = vmatprep.subr.bf16.mxu0 %v1914_v40 }
 0x724   :  { %v1209_v44 = vpop.f32.mrb[40].mxu0  ;;  %v1250_v11 = vpop.f32.mrb[40].mxu1 }
 0x725   :  { %v1257_v59 = vadd.f32 %v1209_v44, %v2704_v12  ;;  %v1259_v41 = vadd.f32 %v1250_v11, %v2705_v13  ;;  %v1211_v48 = vpop.f32.mrb[41].mxu0  ;;  %v1252_v46 = vpop.f32.mrb[41].mxu1  ;;  %v2708_v11 = vld [vmem:[#allocation23_spill] sm:$0xff] }
 0x726   :  { %v1258_v34 = vadd.f32 %v1211_v48, %v2706_v14  ;;  %v1260_v25 = vadd.f32 %v1252_v46, %v2707_v50  ;;  %v1213_v62 = vpop.f32.mrb[42].mxu0  ;;  %v1254_v52 = vpop.f32.mrb[42].mxu1  ;;  %v2710_v46 = vld [vmem:[#allocation25_spill] sm:$0xff] }
 0x727   :  { %v1575_v55 = vmul.f32 -1.442695, %v1257_v59  ;;  %v1214_v53 = vpop.f32.mrb[43].mxu0  ;;  %v1255_v1 = vpop.f32.mrb[43].mxu1  ;;  %v2709_v59 = vld [vmem:[#allocation24_spill] sm:$0xff] }
 0x728   :  { %v1576_v56 = vmul.f32 -1.442695, %v1258_v34  ;;  %v1577_v5 = vmul.f32 -1.442695, %v1260_v25  ;;  %v2711_v34 = vld [vmem:[#allocation26_spill] sm:$0xff] }
 0x729   :  { %1821 = vpow2.f32 %v1575_v55 }
 0x72a   :  { %1823 = vpow2.f32 %v1576_v56 }
 0x72b   :  { %1825 = vpow2.f32 %v1577_v5 }
 0x72c   :  { %1827 = vtanh.f32 %v1259_v41 }
 0x733   :  { %v1822_v54 = vpop.eup %1821 }
 0x734   :  { %v1824_v58 = vpop.eup %1823  ;;  %v1264_v57 = vadd.f32 1.0, %v1822_v54 }
 0x735   :  { %v1270_v60 = vadd.f32 1.0, %v1824_v58  ;;  %v1826_v8 = vpop.eup %1825 }
 0x736   :  { %1829 = vrcp.f32 %v1264_v57  ;;  %v1828_v9 = vpop.eup %1827  ;;  %v1277_v20 = vadd.f32 1.0, %v1826_v8 }
 0x737   :  { %1831 = vrcp.f32 %v1270_v60 }
 0x738   :  { %1833 = vrcp.f32 %v1277_v20 }
 0x740   :  { %v1830_v17 = vpop.eup %1829 }
 0x741   :  { %v1832_v18 = vpop.eup %1831  ;;  %v1281_v19 = vmul.f32 %v1830_v17, %v1828_v9 }
 0x742   :  { %v1280_v21 = vmul.f32 %v1832_v18, %v2546_v27  ;;  %v1834_v24 = vpop.eup %1833  ;;  %v1422_v27 = vld [vmem:[%s2662_s5 + $0x60] sm:$0xff] }
 0x743   :  { %v1653_v29 = vpack.c.bf16 %v1423_v28, %v1422_v27 }
 0x744   :  { %v2591_v22 = vadd.f32 %v1281_v19, %v1280_v21 }
 0x746   :  { %1835 = vtanh.f32 %v2591_v22 }
 0x750   :  { %v1836_v15 = vpop.eup %1835 }
 0x751   :  { %v1284_v35 = vmul.f32 %v1836_v15, %v1834_v24  ;;  %v1407_v24 = vpop.permute.xlu1 %1406 }
 0x752   :  { %vm1408_vm1 = vcmp.eq.s32.totalorder %v1407_v24, 1 }
 0x753   :  { %v2595_v16 = vsel %vm1290_vm15, %v1284_v35, %v2550_v32  ;;  %v1292_v36 = vpack.c.bf16 %v1284_v35, %v1284_v35  ;;  %v1656_v32 = vpack.c.bf16 %v1425_v31, %v1424_v30 }
 0x755   :  { %1326 = vmatmul.mubr.bf16.vlgmr.msra.gmra.mrb[44].mxu0 %v1292_v36  ;;  %1367 = vmatmul.mubr.bf16.vlgmr.msra.gmra.mrb[44].mxu1 %v1292_v36 }
 0x756   :  { %1636 = vmatpush3.bf16.msra.mxu0 %v1635_v39  ;;  %1631 = vmatprep.mubr.msk.f32.mxu0 %vm1915_vm0, %v1916_v33 }
 0x757   :  { %1637 = vmatprep.subr.bf16.mxu0 %v1914_v40 }
 0x75a   :  { %1639 = vmatpush3.bf16.msra.mxu0 %v1638_v51 }
 0x75b   :  { %1640 = vmatprep.subr.bf16.mxu0 %v1914_v40 }
 0x75e   :  { %1642 = vmatpush3.bf16.msra.mxu0 %v1641_v61 }
 0x75f   :  { %1643 = vmatprep.subr.bf16.mxu0 %v1914_v40 }
 0x762   :  { %1645 = vmatpush3.bf16.msra.mxu0 %v1644_v6 }
 0x763   :  { %1646 = vmatprep.subr.bf16.mxu0 %v1914_v40 }
 0x766   :  { %1648 = vmatpush3.bf16.msra.mxu0 %v1647_v43 }
 0x767   :  { %1649 = vmatprep.subr.bf16.mxu0 %v1914_v40 }
 0x76a   :  { %1651 = vmatpush3.bf16.msra.mxu0 %v1650_v26 }
 0x76b   :  { %1652 = vmatprep.subr.bf16.mxu0 %v1914_v40 }
 0x76e   :  { %1654 = vmatpush3.bf16.msra.mxu0 %v1653_v29 }
 0x76f   :  { %1655 = vmatprep.subr.bf16.mxu0 %v1914_v40 }
 0x772   :  { %1657 = vmatpush3.bf16.msra.mxu0 %v1656_v32 }
 0x828   :  { %v1327_v10 = vpop.f32.mrb[44].mxu0  ;;  %v1368_v44 = vpop.f32.mrb[44].mxu1 }
 0x829   :  { %v1375_v12 = vadd.f32 %v1327_v10, %v2708_v11  ;;  %v1377_v13 = vadd.f32 %v1368_v44, %v2709_v59  ;;  %v1329_v41 = vpop.f32.mrb[45].mxu0  ;;  %v1370_v48 = vpop.f32.mrb[45].mxu1 }
 0x82a   :  { %v1376_v14 = vadd.f32 %v1329_v41, %v2710_v46  ;;  %v1378_v50 = vadd.f32 %v1370_v48, %v2711_v34  ;;  %v1331_v25 = vpop.f32.mrb[46].mxu0  ;;  %v1372_v62 = vpop.f32.mrb[46].mxu1 }
 0x82b   :  { %v1578_v52 = vmul.f32 -1.442695, %v1375_v12  ;;  %v1332_v55 = vpop.f32.mrb[47].mxu0  ;;  %v1373_v53 = vpop.f32.mrb[47].mxu1 }
 0x82c   :  { %v1579_v1 = vmul.f32 -1.442695, %v1376_v14  ;;  %v1580_v56 = vmul.f32 -1.442695, %v1378_v50 }
 0x82d   :  { %1837 = vpow2.f32 %v1578_v52 }
 0x82e   :  { %1839 = vpow2.f32 %v1579_v1 }
 0x82f   :  { %1841 = vpow2.f32 %v1580_v56 }
 0x830   :  { %1843 = vtanh.f32 %v1377_v13 }
 0x837   :  { %v1838_v5 = vpop.eup %1837 }
 0x838   :  { %v1840_v54 = vpop.eup %1839  ;;  %v1382_v58 = vadd.f32 1.0, %v1838_v5 }
 0x839   :  { %v1388_v57 = vadd.f32 1.0, %v1840_v54  ;;  %v1842_v60 = vpop.eup %1841 }
 0x83a   :  { %1845 = vrcp.f32 %v1382_v58  ;;  %v1844_v8 = vpop.eup %1843  ;;  %v1395_v19 = vadd.f32 1.0, %v1842_v60 }
 0x83b   :  { %1847 = vrcp.f32 %v1388_v57 }
 0x83c   :  { %1849 = vrcp.f32 %v1395_v19 }
 0x844   :  { %v1846_v9 = vpop.eup %1845 }
 0x845   :  { %v1848_v17 = vpop.eup %1847  ;;  %v1399_v18 = vmul.f32 %v1846_v9, %v1844_v8 }
 0x846   :  { %v1398_v20 = vmul.f32 %v1848_v17, %v2591_v22  ;;  %v1850_v23 = vpop.eup %1849 }
 0x848   :  { %v1400_v21 = vadd.f32 %v1399_v18, %v1398_v20 }
 0x84a   :  { %1851 = vtanh.f32 %v1400_v21 }
 0x854   :  { %v1852_v15 = vpop.eup %1851 }
 0x855   :  { %v1402_v35 = vmul.f32 %v1852_v15, %v1850_v23 }
 0x857   :  { %v1409_v36 = vsel %vm1408_vm1, %v1402_v35, %v2595_v16 }
 0x858   :  { %1632 = vmatmul.mubr.f32.vlgmr.msra.gmra.mrb[48].mxu0 %v1409_v36 }
 0x92b   :  { %v1499_v38 = vpop.f32.mrb[48].mxu0 }
 0x92c   :  { %v1500_v39 = vadd.f32 %v1581_v37, %v1499_v38  ;;  %v1633_v40 = vpop.f32.mrb[49].mxu0 }
 0x92e   :  { %1503 = vst [vmem:[%s2664_s7] sm:$0xff] %v1500_v39 }
 0x92f   :  { %1508 = vsyncpa [#allocation3], 1 }

</bundles_post_ra>
